<compile_context>
chip_gen: v7x
topology: tpu7x:2x2x1
jax: 0.10.0
libtpu: 0.0.40
codegen_flags: <defaults>
</compile_context>

<pallas_src>
import functools
import math

import jax
import jax.numpy as jnp
from jax.experimental import pallas as pl
from jax.experimental.pallas import tpu as pltpu

_MIB = 1024 * 1024


# ----------------------------------------------------------------------------
# Helpers
# ----------------------------------------------------------------------------
def _layernorm_f32(h, gamma, beta, eps=1e-12):
    mu = jnp.mean(h, axis=-1, keepdims=True)
    var = jnp.mean((h - mu) ** 2, axis=-1, keepdims=True)
    return (h - mu) * jax.lax.rsqrt(var + eps) * gamma + beta


def _choose_config(S):
    """Per-TPU-generation (query_tile, vmem_limit_bytes) choice."""
    kind = ""
    try:
        kind = jax.devices()[0].device_kind.lower()
    except Exception:
        pass
    if "v6" in kind:                                   # 256-wide MXU, 128 MiB VMEM
        tile_prefs, vmem_limit = (256, 128), 100 * _MIB
    elif "v5 lite" in kind or "v5e" in kind or "v5lite" in kind:
        tile_prefs, vmem_limit = (128, 256), 100 * _MIB  # 128-wide MXU, 128 MiB VMEM
    elif "v7" in kind:                                 # 64 MiB VMEM per TC
        tile_prefs, vmem_limit = (128, 256), 48 * _MIB
    else:                                              # unknown: conservative
        tile_prefs, vmem_limit = (128, 256), 48 * _MIB
    for t in tile_prefs:
        if S >= t and S % t == 0:
            return t, vmem_limit
    return S, vmem_limit


# ----------------------------------------------------------------------------
# Pallas kernel: one BertLayer for one (batch, query-tile) grid point.
#   grid = (B, n_q), semantics ("parallel", "arbitrary").
#   K/V (already head-major, bf16) cached in VMEM scratch per batch element.
# ----------------------------------------------------------------------------
def _bert_layer_kernel(
    x_ref, mask_ref,
    wqT_ref, bqT_ref, wkvT_ref, bkvT_ref,
    wo_ref, bo_ref, ln1g_ref, ln1b_ref,
    wi_ref, bi_ref, wo2_ref, bo2_ref, ln2g_ref, ln2b_ref,
    out_ref,
    kT_s, v_s,
    *, num_heads, head_dim, q_tile,
):
    f32 = jnp.float32
    bf16 = jnp.bfloat16
    H = num_heads * head_dim
    S = x_ref.shape[1]
    t = pl.program_id(1)

    # ---- K/V projection + head-major relayout, once per batch element ----
    @pl.when(t == 0)
    def _compute_kv():
        xf_b = x_ref[0].astype(bf16)                                   # [S, H]
        # kvT[j, s] = sum_h wkvT[j, h] * x[s, h]   (trans-B matmul on the MXU)
        kvT = jax.lax.dot_general(
            wkvT_ref[...], xf_b, (((1,), (1,)), ((), ())),
            preferred_element_type=f32) + bkvT_ref[...]                # [2H, S]
        kT = kvT[:H, :].astype(bf16)                                   # [H, S]
        vT = kvT[H:, :].astype(bf16)                                   # [H, S]
        # K stays [nh, hd, S] (no transpose needed); V needs one minor swap.
        kT_s[...] = kT.reshape(num_heads, head_dim, S)
        v_s[...] = jnp.transpose(vT.reshape(num_heads, head_dim, S), (0, 2, 1))

    # ---- query tile, sliced from the already-resident full-sequence block ----
    row0 = pl.multiple_of(t * q_tile, q_tile)
    x_q = x_ref[0, pl.ds(row0, q_tile), :]            # [TQ, H]  f32 residual stream
    xq_b = x_q.astype(bf16)

    # Q projection (scale folded into wqT/bqT at param-prep time), transposed
    # orientation so the head split is a leading-dim reshape + one minor swap.
    qT = jax.lax.dot_general(
        wqT_ref[...], xq_b, (((1,), (1,)), ((), ())),
        preferred_element_type=f32) + bqT_ref[...]                     # [H, TQ]
    q3 = jnp.transpose(qT.astype(bf16).reshape(num_heads, head_dim, q_tile),
                       (0, 2, 1))                                      # [nh, TQ, hd]

    # ---- attention, batched over heads (standard [b,m,k]x[b,k,n] matmuls) ----
    scores = jax.lax.dot_general(
        q3, kT_s[...], (((2,), (1,)), ((0,), (0,))),
        preferred_element_type=f32)                                    # [nh, TQ, S]
    mask = mask_ref[0]                                                 # [1, S]
    scores = scores + mask[None, :, :]
    scores = scores - jnp.max(scores, axis=-1, keepdims=True)
    probs = jnp.exp(scores)
    inv_denom = pl.reciprocal(jnp.sum(probs, axis=-1, keepdims=True), approx=True)
    probs = (probs * inv_denom).astype(bf16)
    # TODO(synk): head_mask (per-head probability scaling) is always None here.

    ctx3 = jax.lax.dot_general(
        probs, v_s[...], (((2,), (1,)), ((0,), (0,))),
        preferred_element_type=f32)                                    # [nh, TQ, hd]
    # Merge heads back to [TQ, H] so the output projection is ONE full-K matmul.
    ctx = jnp.transpose(ctx3.astype(bf16), (0, 2, 1)).reshape(H, q_tile).T

    # ---- attention output projection + residual + LayerNorm (f32) ----
    attn = jnp.dot(ctx, wo_ref[...], preferred_element_type=f32) + bo_ref[...]
    h1 = _layernorm_f32(attn + x_q, ln1g_ref[...], ln1b_ref[...])

    # ---- feed-forward: dense -> GELU (exact erf) -> dense + residual + LN ----
    inter = jnp.dot(h1.astype(bf16), wi_ref[...], preferred_element_type=f32) + bi_ref[...]
    inter = 0.5 * inter * (1.0 + jax.lax.erf(inter * 0.7071067811865475))
    ffn = jnp.dot(inter.astype(bf16), wo2_ref[...], preferred_element_type=f32) + bo2_ref[...]
    h2 = _layernorm_f32(ffn + h1, ln2g_ref[...], ln2b_ref[...])

    out_ref[0] = h2.astype(out_ref.dtype)


# ----------------------------------------------------------------------------
# Cached pallas_call builder (one compile per layer shape / config).
# ----------------------------------------------------------------------------
@functools.lru_cache(maxsize=None)
def _build_layer_fn(B, S, H, num_heads, inter_size, dtype_name, q_tile,
                    single_buffer, vmem_limit):
    head_dim = H // num_heads
    n_q = S // q_tile
    out_dtype = jnp.dtype(dtype_name)

    kernel = functools.partial(
        _bert_layer_kernel,
        num_heads=num_heads, head_dim=head_dim, q_tile=q_tile,
    )

    def const_spec(shape):
        idx = lambda b, t, _s=len(shape): (0,) * _s
        if single_buffer:
            # Constant index map: one buffer is enough; halves weight residency.
            return pl.BlockSpec(shape, idx, pipeline_mode=pl.Buffered(1))
        return pl.BlockSpec(shape, idx)

    in_specs = [
        pl.BlockSpec((1, S, H), lambda b, t: (b, 0, 0)),    # full sequence (Q slice + K/V)
        pl.BlockSpec((1, 1, S), lambda b, t: (b, 0, 0)),    # additive mask
        const_spec((H, H)), const_spec((H, 1)),             # WqT (scaled), bqT (scaled)
        const_spec((2 * H, H)), const_spec((2 * H, 1)),     # fused W_kv^T, b_kv^T
        const_spec((H, H)), const_spec((1, H)),             # Wo, bo
        const_spec((1, H)), const_spec((1, H)),             # ln1 gamma, beta
        const_spec((H, inter_size)), const_spec((1, inter_size)),   # Wi, bi
        const_spec((inter_size, H)), const_spec((1, H)),    # Wo2, bo2
        const_spec((1, H)), const_spec((1, H)),             # ln2 gamma, beta
    ]

    fn = pl.pallas_call(
        kernel,
        out_shape=jax.ShapeDtypeStruct((B, S, H), out_dtype),
        grid=(B, n_q),
        in_specs=in_specs,
        out_specs=pl.BlockSpec((1, q_tile, H), lambda b, t: (b, t, 0)),
        scratch_shapes=[
            pltpu.VMEM((num_heads, head_dim, S), jnp.bfloat16),   # K^T, head-major
            pltpu.VMEM((num_heads, S, head_dim), jnp.bfloat16),   # V,   head-major
        ],
        compiler_params=pltpu.CompilerParams(
            # q-tile axis must be "arbitrary" so the cached K/V scratch is valid;
            # batch axis stays "parallel" for megacore / dual-TC sharding.
            dimension_semantics=("parallel", "arbitrary"),
            vmem_limit_bytes=vmem_limit,
        ),
    )
    return jax.jit(fn)


def _bert_layer_call(layer_params, hidden_states, add_mask, single_buffer):
    B, S, H = hidden_states.shape
    num_heads = layer_params["num_heads"]
    inter_size = layer_params["wi"].shape[1]
    q_tile, vmem_limit = _choose_config(S)
    if not single_buffer:
        vmem_limit = 48 * _MIB      # conservative fallback configuration
    fn = _build_layer_fn(B, S, H, num_heads, inter_size,
                         str(hidden_states.dtype), q_tile, single_buffer, vmem_limit)
    p = layer_params
    return fn(hidden_states, add_mask,
              p["wqT"], p["bqT"], p["wkvT"], p["bkvT"],
              p["wo"], p["bo"], p["ln1_g"], p["ln1_b"],
              p["wi"], p["bi"], p["wo2"], p["bo2"], p["ln2_g"], p["ln2_b"])


_SINGLE_BUFFER_OK = [True]   # flipped off if this jax rejects pl.Buffered(1)


def bert_layer(layer_params, hidden_states, add_mask):
    """hidden_states: [B, S, H] f32; add_mask: [B, 1, S] additive f32 mask."""
    if _SINGLE_BUFFER_OK[0]:
        try:
            return _bert_layer_call(layer_params, hidden_states, add_mask, True)
        except Exception:
            _SINGLE_BUFFER_OK[0] = False
    return _bert_layer_call(layer_params, hidden_states, add_mask, False)


# ----------------------------------------------------------------------------
# BertEncoder4Mix forward (control flow is glue; compute is in the kernel).
# ----------------------------------------------------------------------------
def _make_additive_mask(attention_mask, B, S):
    if attention_mask is None:
        return jnp.zeros((B, 1, S), jnp.float32)
    return ((1.0 - attention_mask.astype(jnp.float32)) * -10000.0).reshape(B, 1, S)


def bert_encoder4mix(
    layers_params,
    hidden_states,
    attention_mask=None,
    hidden_states2=None,
    attention_mask2=None,
    l=None,
    mix_layer=1000,
    head_mask=None,
):
    # TODO(synk): head_mask is ignored (always a list of None for this model).
    B, S, H = hidden_states.shape
    num_layers = len(layers_params)
    output_hidden_states = True
    all_hidden_states = ()

    add_mask = _make_additive_mask(attention_mask, B, S)

    if mix_layer == -1 and hidden_states2 is not None:
        hidden_states = l * hidden_states + (1 - l) * hidden_states2

    # Layers 0..mix_layer run on BOTH streams (matching the reference); after
    # that only stream 1 continues.  The reference's `elif i == mix_layer:`
    # branch is unreachable (i <= mix_layer already covers equality), so no
    # in-loop mixing / mask-OR ever happens -- mirrored here exactly.
    dual = (hidden_states2 is not None) and (mix_layer >= 0)
    n_dual = min(num_layers, mix_layer + 1) if dual else 0

    if n_dual > 0:
        add_mask2 = _make_additive_mask(attention_mask2, B, S)
        # Concatenate ONCE (not per layer): both streams share weights, doubling
        # the parallel grid and streaming each layer's weights HBM->VMEM once.
        x_cat = jnp.concatenate([hidden_states, hidden_states2], axis=0)
        m_cat = jnp.concatenate([add_mask, add_mask2], axis=0)
        for i in range(n_dual):
            if output_hidden_states:
                all_hidden_states = all_hidden_states + (x_cat[:B],)
            x_cat = bert_layer(layers_params[i], x_cat, m_cat)
        hidden_states, hidden_states2 = x_cat[:B], x_cat[B:]

    for i in range(n_dual, num_layers):
        if output_hidden_states:
            all_hidden_states = all_hidden_states + (hidden_states,)
        hidden_states = bert_layer(layers_params[i], hidden_states, add_mask)

    if output_hidden_states:
        all_hidden_states = all_hidden_states + (hidden_states,)

    outputs = (hidden_states,)
    if output_hidden_states:
        outputs = outputs + (all_hidden_states,)
    return outputs


# ----------------------------------------------------------------------------
# Deterministic parameter init (synthetic; shapes from a small BERT config).
# Matmul weights are stored bf16 (pre-transposed / pre-scaled where useful);
# biases and LayerNorm params stay f32.
# ----------------------------------------------------------------------------
def init_bert_layer_params(key, hidden_size, intermediate_size, num_heads, std=0.02):
    ks = jax.random.split(key, 6)
    H, I = hidden_size, intermediate_size
    head_dim = H // num_heads
    scale = 1.0 / math.sqrt(head_dim)

    def lin(k, din, dout):
        return std * jax.random.normal(k, (din, dout), jnp.float32)

    wq = lin(ks[0], H, H)
    wk = lin(ks[1], H, H)
    wv = lin(ks[2], H, H)
    wo = lin(ks[3], H, H)
    wi = lin(ks[4], H, I)
    wo2 = lin(ks[5], I, H)
    wkv = jnp.concatenate([wk, wv], axis=1)                    # [H, 2H] fused K/V

    return {
        "num_heads": num_heads,
        # 1/sqrt(head_dim) folded into the (pre-transposed) Q projection.
        "wqT": (wq * scale).T.astype(jnp.bfloat16),            # [H, H]
        "bqT": jnp.zeros((H, 1), jnp.float32),                 # (scaled) bias, [H,1]
        "wkvT": wkv.T.astype(jnp.bfloat16),                    # [2H, H]
        "bkvT": jnp.zeros((2 * H, 1), jnp.float32),
        "wo": wo.astype(jnp.bfloat16), "bo": jnp.zeros((1, H), jnp.float32),
        "ln1_g": jnp.ones((1, H), jnp.float32), "ln1_b": jnp.zeros((1, H), jnp.float32),
        "wi": wi.astype(jnp.bfloat16), "bi": jnp.zeros((1, I), jnp.float32),
        "wo2": wo2.astype(jnp.bfloat16), "bo2": jnp.zeros((1, H), jnp.float32),
        "ln2_g": jnp.ones((1, H), jnp.float32), "ln2_b": jnp.zeros((1, H), jnp.float32),
    }


if __name__ == "__main__":
    # small config: batch=2, seq=8, hidden=32, heads=4, intermediate=64, layers=2
    B, S, H = 2, 8, 32
    NUM_HEADS = 4
    INTERMEDIATE = 64
    NUM_LAYERS = 2

    root = jax.random.PRNGKey(0)
    k_params, k_x1, k_x2 = jax.random.split(root, 3)
    layer_keys = jax.random.split(k_params, NUM_LAYERS)
    layers_params = [
        init_bert_layer_params(layer_keys[i], H, INTERMEDIATE, NUM_HEADS)
        for i in range(NUM_LAYERS)
    ]

    hidden_states = jax.random.normal(k_x1, (B, S, H), jnp.float32)
    hidden_states2 = jax.random.normal(k_x2, (B, S, H), jnp.float32)
    attention_mask = jnp.ones((B, S), jnp.float32)
    attention_mask2 = jnp.ones((B, S), jnp.float32)
    head_mask = [None] * NUM_LAYERS
    l = 0.7

    outputs = bert_encoder4mix(
        layers_params,
        hidden_states,
        attention_mask=attention_mask,
        hidden_states2=hidden_states2,
        attention_mask2=attention_mask2,
        l=l,
        mix_layer=1000,
        head_mask=head_mask,
    )

    final_hidden = jax.block_until_ready(outputs[0])
    all_hidden = outputs[1]
    assert final_hidden.shape == (B, S, H)
    assert len(all_hidden) == NUM_LAYERS + 1
    assert bool(jnp.all(jnp.isfinite(final_hidden)))
    print("KERNEL_OK")
</pallas_src>

<mosaic_0001>
module attributes {stable_mosaic.version = 11 : i64} {
  func.func @_bert_layer_kernel(%arg0: i32, %arg1: i32, %arg2: memref<1x8x32xf32, #tpu.memory_space<vmem>>, %arg3: memref<1x1x8xf32, #tpu.memory_space<vmem>>, %arg4: memref<32x32xbf16, #tpu.memory_space<vmem>>, %arg5: memref<32x1xf32, #tpu.memory_space<vmem>>, %arg6: memref<64x32xbf16, #tpu.memory_space<vmem>>, %arg7: memref<64x1xf32, #tpu.memory_space<vmem>>, %arg8: memref<32x32xbf16, #tpu.memory_space<vmem>>, %arg9: memref<1x32xf32, #tpu.memory_space<vmem>>, %arg10: memref<1x32xf32, #tpu.memory_space<vmem>>, %arg11: memref<1x32xf32, #tpu.memory_space<vmem>>, %arg12: memref<32x64xbf16, #tpu.memory_space<vmem>>, %arg13: memref<1x64xf32, #tpu.memory_space<vmem>>, %arg14: memref<64x32xbf16, #tpu.memory_space<vmem>>, %arg15: memref<1x32xf32, #tpu.memory_space<vmem>>, %arg16: memref<1x32xf32, #tpu.memory_space<vmem>>, %arg17: memref<1x32xf32, #tpu.memory_space<vmem>>, %arg18: memref<1x8x32xf32, #tpu.memory_space<vmem>>, %arg19: memref<4x8x8xbf16, #tpu.memory_space<vmem>>, %arg20: memref<4x8x8xbf16, #tpu.memory_space<vmem>>) attributes {dimension_semantics = [#tpu.dimension_semantics<parallel>, #tpu.dimension_semantics<arbitrary>], iteration_bounds = array<i64: 4, 1>, scalar_prefetch = 0 : i64, scratch_operands = 2 : i64, tpu.core_type = #tpu.core_type<tc>, window_params = [{transform_indices = @transform_0, window_bounds = array<i64: 1, 8, 32>}, {transform_indices = @transform_1, window_bounds = array<i64: 1, 1, 8>}, {pipeline_mode = #tpu.pipeline_mode<synchronous>, transform_indices = @transform_2, window_bounds = array<i64: 32, 32>}, {pipeline_mode = #tpu.pipeline_mode<synchronous>, transform_indices = @transform_3, window_bounds = array<i64: 32, 1>}, {pipeline_mode = #tpu.pipeline_mode<synchronous>, transform_indices = @transform_4, window_bounds = array<i64: 64, 32>}, {pipeline_mode = #tpu.pipeline_mode<synchronous>, transform_indices = @transform_5, window_bounds = array<i64: 64, 1>}, {pipeline_mode = #tpu.pipeline_mode<synchronous>, transform_indices = @transform_6, window_bounds = array<i64: 32, 32>}, {pipeline_mode = #tpu.pipeline_mode<synchronous>, transform_indices = @transform_7, window_bounds = array<i64: 1, 32>}, {pipeline_mode = #tpu.pipeline_mode<synchronous>, transform_indices = @transform_8, window_bounds = array<i64: 1, 32>}, {pipeline_mode = #tpu.pipeline_mode<synchronous>, transform_indices = @transform_9, window_bounds = array<i64: 1, 32>}, {pipeline_mode = #tpu.pipeline_mode<synchronous>, transform_indices = @transform_10, window_bounds = array<i64: 32, 64>}, {pipeline_mode = #tpu.pipeline_mode<synchronous>, transform_indices = @transform_11, window_bounds = array<i64: 1, 64>}, {pipeline_mode = #tpu.pipeline_mode<synchronous>, transform_indices = @transform_12, window_bounds = array<i64: 64, 32>}, {pipeline_mode = #tpu.pipeline_mode<synchronous>, transform_indices = @transform_13, window_bounds = array<i64: 1, 32>}, {pipeline_mode = #tpu.pipeline_mode<synchronous>, transform_indices = @transform_14, window_bounds = array<i64: 1, 32>}, {pipeline_mode = #tpu.pipeline_mode<synchronous>, transform_indices = @transform_15, window_bounds = array<i64: 1, 32>}, {transform_indices = @transform_16, window_bounds = array<i64: 1, 8, 32>}]} {
    %c0_i32 = arith.constant 0 : i32
    %0 = arith.cmpi eq, %arg1, %c0_i32 : i32
    %1 = arith.extui %0 : i1 to i32
    %c0_i32_0 = arith.constant 0 : i32
    %2 = arith.cmpi ne, %1, %c0_i32_0 : i32
    scf.if %2 {
      %c0_58 = arith.constant 0 : index
      %c0_59 = arith.constant 0 : index
      %c0_60 = arith.constant 0 : index
      %119 = vector.load %arg2[%c0_58, %c0_59, %c0_60] : memref<1x8x32xf32, #tpu.memory_space<vmem>>, vector<1x8x32xf32>
      %120 = vector.shape_cast %119 : vector<1x8x32xf32> to vector<8x32xf32>
      %121 = arith.truncf %120 : vector<8x32xf32> to vector<8x32xbf16>
      %c0_61 = arith.constant 0 : index
      %c0_62 = arith.constant 0 : index
      %122 = vector.load %arg6[%c0_61, %c0_62] : memref<64x32xbf16, #tpu.memory_space<vmem>>, vector<64x32xbf16>
      %cst_63 = arith.constant dense<0.000000e+00> : vector<64x8xf32>
      %123 = tpu.matmul %122, %121, %cst_63 {dimension_numbers = #tpu.dot_dimension_numbers<[1], [1], [0], [0], [0, 0, 1, 0], [], []>} : vector<64x32xbf16>, vector<8x32xbf16>, vector<64x8xf32> -> vector<64x8xf32>
      %c0_64 = arith.constant 0 : index
      %c0_65 = arith.constant 0 : index
      %124 = vector.load %arg7[%c0_64, %c0_65] : memref<64x1xf32, #tpu.memory_space<vmem>>, vector<64x1xf32>
      %125 = vector.broadcast %124 : vector<64x1xf32> to vector<64x8xf32>
      %126 = arith.addf %123, %125 : vector<64x8xf32>
      %127 = vector.extract_strided_slice %126 {offsets = [0, 0], sizes = [32, 8], strides = [1, 1]} : vector<64x8xf32> to vector<32x8xf32>
      %128 = arith.truncf %127 : vector<32x8xf32> to vector<32x8xbf16>
      %129 = vector.extract_strided_slice %126 {offsets = [32, 0], sizes = [32, 8], strides = [1, 1]} : vector<64x8xf32> to vector<32x8xf32>
      %130 = arith.truncf %129 : vector<32x8xf32> to vector<32x8xbf16>
      %131 = vector.shape_cast %128 : vector<32x8xbf16> to vector<4x8x8xbf16>
      %c0_66 = arith.constant 0 : index
      %c0_67 = arith.constant 0 : index
      %c0_68 = arith.constant 0 : index
      %132 = vector.load %arg19[%c0_66, %c0_67, %c0_68] : memref<4x8x8xbf16, #tpu.memory_space<vmem>>, vector<4x8x8xbf16>
      tpu.vector_store %arg19[%c0_66, %c0_67, %c0_68], %131 {strides = array<i32>} : memref<4x8x8xbf16, #tpu.memory_space<vmem>>, vector<4x8x8xbf16>,
      %133 = vector.shape_cast %130 : vector<32x8xbf16> to vector<4x8x8xbf16>
      %134 = tpu.transpose %133, [0, 2, 1] : vector<4x8x8xbf16> -> vector<4x8x8xbf16>
      %c0_69 = arith.constant 0 : index
      %c0_70 = arith.constant 0 : index
      %c0_71 = arith.constant 0 : index
      %135 = vector.load %arg20[%c0_69, %c0_70, %c0_71] : memref<4x8x8xbf16, #tpu.memory_space<vmem>>, vector<4x8x8xbf16>
      tpu.vector_store %arg20[%c0_69, %c0_70, %c0_71], %134 {strides = array<i32>} : memref<4x8x8xbf16, #tpu.memory_space<vmem>>, vector<4x8x8xbf16>,
    } else {
    }
    %c8_i32 = arith.constant 8 : i32
    %3 = arith.muli %arg1, %c8_i32 : i32
    %4 = tpu.assume_multiple %3, 8 : i32
    %c0 = arith.constant 0 : index
    %5 = arith.index_cast %4 : i32 to index
    %c0_1 = arith.constant 0 : index
    %6 = vector.load %arg2[%c0, %5, %c0_1] : memref<1x8x32xf32, #tpu.memory_space<vmem>>, vector<1x8x32xf32>
    %7 = vector.shape_cast %6 : vector<1x8x32xf32> to vector<8x32xf32>
    %8 = arith.truncf %7 : vector<8x32xf32> to vector<8x32xbf16>
    %c0_2 = arith.constant 0 : index
    %c0_3 = arith.constant 0 : index
    %9 = vector.load %arg4[%c0_2, %c0_3] : memref<32x32xbf16, #tpu.memory_space<vmem>>, vector<32x32xbf16>
    %cst = arith.constant dense<0.000000e+00> : vector<32x8xf32>
    %10 = tpu.matmul %9, %8, %cst {dimension_numbers = #tpu.dot_dimension_numbers<[1], [1], [0], [0], [0, 0, 1, 0], [], []>} : vector<32x32xbf16>, vector<8x32xbf16>, vector<32x8xf32> -> vector<32x8xf32>
    %c0_4 = arith.constant 0 : index
    %c0_5 = arith.constant 0 : index
    %11 = vector.load %arg5[%c0_4, %c0_5] : memref<32x1xf32, #tpu.memory_space<vmem>>, vector<32x1xf32>
    %12 = vector.broadcast %11 : vector<32x1xf32> to vector<32x8xf32>
    %13 = arith.addf %10, %12 : vector<32x8xf32>
    %14 = arith.truncf %13 : vector<32x8xf32> to vector<32x8xbf16>
    %15 = vector.shape_cast %14 : vector<32x8xbf16> to vector<4x8x8xbf16>
    %16 = tpu.transpose %15, [0, 2, 1] : vector<4x8x8xbf16> -> vector<4x8x8xbf16>
    %c0_6 = arith.constant 0 : index
    %c0_7 = arith.constant 0 : index
    %c0_8 = arith.constant 0 : index
    %17 = vector.load %arg19[%c0_6, %c0_7, %c0_8] : memref<4x8x8xbf16, #tpu.memory_space<vmem>>, vector<4x8x8xbf16>
    %cst_9 = arith.constant dense<0.000000e+00> : vector<4x8x8xf32>
    %18 = tpu.matmul %16, %17, %cst_9 {dimension_numbers = #tpu.dot_dimension_numbers<[2], [1], [1], [2], [0, 0, 0, 1, 1, 2], [0], [0]>} : vector<4x8x8xbf16>, vector<4x8x8xbf16>, vector<4x8x8xf32> -> vector<4x8x8xf32>
    %c0_10 = arith.constant 0 : index
    %c0_11 = arith.constant 0 : index
    %c0_12 = arith.constant 0 : index
    %19 = vector.load %arg3[%c0_10, %c0_11, %c0_12] : memref<1x1x8xf32, #tpu.memory_space<vmem>>, vector<1x1x8xf32>
    %20 = vector.shape_cast %19 : vector<1x1x8xf32> to vector<1x8xf32>
    %21 = vector.shape_cast %20 : vector<1x8xf32> to vector<1x1x8xf32>
    %22 = vector.broadcast %21 : vector<1x1x8xf32> to vector<4x8x8xf32>
    %23 = arith.addf %18, %22 : vector<4x8x8xf32>
    %cst_13 = arith.constant dense<0xFF800000> : vector<4x8xf32>
    %24 = vector.multi_reduction <maximumf>, %23, %cst_13 [2] : vector<4x8x8xf32> to vector<4x8xf32>
    %25 = vector.shape_cast %24 : vector<4x8xf32> to vector<4x8x1xf32>
    %26 = vector.broadcast %25 : vector<4x8x1xf32> to vector<4x8x8xf32>
    %27 = arith.subf %23, %26 : vector<4x8x8xf32>
    %28 = math.exp %27 : vector<4x8x8xf32>
    %cst_14 = arith.constant dense<0.000000e+00> : vector<4x8xf32>
    %29 = vector.multi_reduction <add>, %28, %cst_14 [2] : vector<4x8x8xf32> to vector<4x8xf32>
    %30 = vector.shape_cast %29 : vector<4x8xf32> to vector<4x8x1xf32>
    %31 = tpu.reciprocal %30 {approx = true} : vector<4x8x1xf32> -> vector<4x8x1xf32>
    %32 = vector.broadcast %31 : vector<4x8x1xf32> to vector<4x8x8xf32>
    %33 = arith.mulf %28, %32 : vector<4x8x8xf32>
    %34 = arith.truncf %33 : vector<4x8x8xf32> to vector<4x8x8xbf16>
    %c0_15 = arith.constant 0 : index
    %c0_16 = arith.constant 0 : index
    %c0_17 = arith.constant 0 : index
    %35 = vector.load %arg20[%c0_15, %c0_16, %c0_17] : memref<4x8x8xbf16, #tpu.memory_space<vmem>>, vector<4x8x8xbf16>
    %cst_18 = arith.constant dense<0.000000e+00> : vector<4x8x8xf32>
    %36 = tpu.matmul %34, %35, %cst_18 {dimension_numbers = #tpu.dot_dimension_numbers<[2], [1], [1], [2], [0, 0, 0, 1, 1, 2], [0], [0]>} : vector<4x8x8xbf16>, vector<4x8x8xbf16>, vector<4x8x8xf32> -> vector<4x8x8xf32>
    %37 = arith.truncf %36 : vector<4x8x8xf32> to vector<4x8x8xbf16>
    %38 = tpu.transpose %37, [0, 2, 1] : vector<4x8x8xbf16> -> vector<4x8x8xbf16>
    %39 = vector.shape_cast %38 : vector<4x8x8xbf16> to vector<32x8xbf16>
    %40 = tpu.transpose %39, [1, 0] : vector<32x8xbf16> -> vector<8x32xbf16>
    %c0_19 = arith.constant 0 : index
    %c0_20 = arith.constant 0 : index
    %41 = vector.load %arg8[%c0_19, %c0_20] : memref<32x32xbf16, #tpu.memory_space<vmem>>, vector<32x32xbf16>
    %cst_21 = arith.constant dense<0.000000e+00> : vector<8x32xf32>
    %42 = tpu.matmul %40, %41, %cst_21 {dimension_numbers = #tpu.dot_dimension_numbers<[1], [0], [0], [1], [0, 0, 1, 1], [], []>} : vector<8x32xbf16>, vector<32x32xbf16>, vector<8x32xf32> -> vector<8x32xf32>
    %c0_22 = arith.constant 0 : index
    %c0_23 = arith.constant 0 : index
    %43 = vector.load %arg9[%c0_22, %c0_23] : memref<1x32xf32, #tpu.memory_space<vmem>>, vector<1x32xf32>
    %44 = vector.broadcast %43 : vector<1x32xf32> to vector<8x32xf32>
    %45 = arith.addf %42, %44 : vector<8x32xf32>
    %46 = arith.addf %45, %7 : vector<8x32xf32>
    %c0_24 = arith.constant 0 : index
    %c0_25 = arith.constant 0 : index
    %47 = vector.load %arg10[%c0_24, %c0_25] : memref<1x32xf32, #tpu.memory_space<vmem>>, vector<1x32xf32>
    %c0_26 = arith.constant 0 : index
    %c0_27 = arith.constant 0 : index
    %48 = vector.load %arg11[%c0_26, %c0_27] : memref<1x32xf32, #tpu.memory_space<vmem>>, vector<1x32xf32>
    %cst_28 = arith.constant dense<0.000000e+00> : vector<8xf32>
    %49 = vector.multi_reduction <add>, %46, %cst_28 [1] : vector<8x32xf32> to vector<8xf32>
    %50 = vector.shape_cast %49 : vector<8xf32> to vector<8x1xf32>
    %cst_29 = arith.constant 3.200000e+01 : f32
    %51 = vector.broadcast %cst_29 : f32 to vector<8x1xf32>
    %52 = arith.divf %50, %51 : vector<8x1xf32>
    %53 = vector.broadcast %52 : vector<8x1xf32> to vector<8x32xf32>
    %54 = arith.subf %46, %53 : vector<8x32xf32>
    %55 = arith.mulf %54, %54 : vector<8x32xf32>
    %cst_30 = arith.constant dense<0.000000e+00> : vector<8xf32>
    %56 = vector.multi_reduction <add>, %55, %cst_30 [1] : vector<8x32xf32> to vector<8xf32>
    %57 = vector.shape_cast %56 : vector<8xf32> to vector<8x1xf32>
    %cst_31 = arith.constant 3.200000e+01 : f32
    %58 = vector.broadcast %cst_31 : f32 to vector<8x1xf32>
    %59 = arith.divf %57, %58 : vector<8x1xf32>
    %60 = vector.broadcast %52 : vector<8x1xf32> to vector<8x32xf32>
    %61 = arith.subf %46, %60 : vector<8x32xf32>
    %cst_32 = arith.constant 9.99999996E-13 : f32
    %62 = vector.broadcast %cst_32 : f32 to vector<8x1xf32>
    %63 = arith.addf %59, %62 : vector<8x1xf32>
    %64 = math.rsqrt %63 : vector<8x1xf32>
    %65 = vector.broadcast %64 : vector<8x1xf32> to vector<8x32xf32>
    %66 = arith.mulf %61, %65 : vector<8x32xf32>
    %67 = vector.broadcast %47 : vector<1x32xf32> to vector<8x32xf32>
    %68 = arith.mulf %66, %67 : vector<8x32xf32>
    %69 = vector.broadcast %48 : vector<1x32xf32> to vector<8x32xf32>
    %70 = arith.addf %68, %69 : vector<8x32xf32>
    %71 = arith.truncf %70 : vector<8x32xf32> to vector<8x32xbf16>
    %c0_33 = arith.constant 0 : index
    %c0_34 = arith.constant 0 : index
    %72 = vector.load %arg12[%c0_33, %c0_34] : memref<32x64xbf16, #tpu.memory_space<vmem>>, vector<32x64xbf16>
    %cst_35 = arith.constant dense<0.000000e+00> : vector<8x64xf32>
    %73 = tpu.matmul %71, %72, %cst_35 {dimension_numbers = #tpu.dot_dimension_numbers<[1], [0], [0], [1], [0, 0, 1, 1], [], []>} : vector<8x32xbf16>, vector<32x64xbf16>, vector<8x64xf32> -> vector<8x64xf32>
    %c0_36 = arith.constant 0 : index
    %c0_37 = arith.constant 0 : index
    %74 = vector.load %arg13[%c0_36, %c0_37] : memref<1x64xf32, #tpu.memory_space<vmem>>, vector<1x64xf32>
    %75 = vector.broadcast %74 : vector<1x64xf32> to vector<8x64xf32>
    %76 = arith.addf %73, %75 : vector<8x64xf32>
    %cst_38 = arith.constant 5.000000e-01 : f32
    %77 = vector.broadcast %cst_38 : f32 to vector<8x64xf32>
    %78 = arith.mulf %77, %76 : vector<8x64xf32>
    %cst_39 = arith.constant 0.707106769 : f32
    %79 = vector.broadcast %cst_39 : f32 to vector<8x64xf32>
    %80 = arith.mulf %76, %79 : vector<8x64xf32>
    %81 = math.erf %80 : vector<8x64xf32>
    %cst_40 = arith.constant 1.000000e+00 : f32
    %82 = vector.broadcast %cst_40 : f32 to vector<8x64xf32>
    %83 = arith.addf %82, %81 : vector<8x64xf32>
    %84 = arith.mulf %78, %83 : vector<8x64xf32>
    %85 = arith.truncf %84 : vector<8x64xf32> to vector<8x64xbf16>
    %c0_41 = arith.constant 0 : index
    %c0_42 = arith.constant 0 : index
    %86 = vector.load %arg14[%c0_41, %c0_42] : memref<64x32xbf16, #tpu.memory_space<vmem>>, vector<64x32xbf16>
    %cst_43 = arith.constant dense<0.000000e+00> : vector<8x32xf32>
    %87 = tpu.matmul %85, %86, %cst_43 {dimension_numbers = #tpu.dot_dimension_numbers<[1], [0], [0], [1], [0, 0, 1, 1], [], []>} : vector<8x64xbf16>, vector<64x32xbf16>, vector<8x32xf32> -> vector<8x32xf32>
    %c0_44 = arith.constant 0 : index
    %c0_45 = arith.constant 0 : index
    %88 = vector.load %arg15[%c0_44, %c0_45] : memref<1x32xf32, #tpu.memory_space<vmem>>, vector<1x32xf32>
    %89 = vector.broadcast %88 : vector<1x32xf32> to vector<8x32xf32>
    %90 = arith.addf %87, %89 : vector<8x32xf32>
    %91 = arith.addf %90, %70 : vector<8x32xf32>
    %c0_46 = arith.constant 0 : index
    %c0_47 = arith.constant 0 : index
    %92 = vector.load %arg16[%c0_46, %c0_47] : memref<1x32xf32, #tpu.memory_space<vmem>>, vector<1x32xf32>
    %c0_48 = arith.constant 0 : index
    %c0_49 = arith.constant 0 : index
    %93 = vector.load %arg17[%c0_48, %c0_49] : memref<1x32xf32, #tpu.memory_space<vmem>>, vector<1x32xf32>
    %cst_50 = arith.constant dense<0.000000e+00> : vector<8xf32>
    %94 = vector.multi_reduction <add>, %91, %cst_50 [1] : vector<8x32xf32> to vector<8xf32>
    %95 = vector.shape_cast %94 : vector<8xf32> to vector<8x1xf32>
    %cst_51 = arith.constant 3.200000e+01 : f32
    %96 = vector.broadcast %cst_51 : f32 to vector<8x1xf32>
    %97 = arith.divf %95, %96 : vector<8x1xf32>
    %98 = vector.broadcast %97 : vector<8x1xf32> to vector<8x32xf32>
    %99 = arith.subf %91, %98 : vector<8x32xf32>
    %100 = arith.mulf %99, %99 : vector<8x32xf32>
    %cst_52 = arith.constant dense<0.000000e+00> : vector<8xf32>
    %101 = vector.multi_reduction <add>, %100, %cst_52 [1] : vector<8x32xf32> to vector<8xf32>
    %102 = vector.shape_cast %101 : vector<8xf32> to vector<8x1xf32>
    %cst_53 = arith.constant 3.200000e+01 : f32
    %103 = vector.broadcast %cst_53 : f32 to vector<8x1xf32>
    %104 = arith.divf %102, %103 : vector<8x1xf32>
    %105 = vector.broadcast %97 : vector<8x1xf32> to vector<8x32xf32>
    %106 = arith.subf %91, %105 : vector<8x32xf32>
    %cst_54 = arith.constant 9.99999996E-13 : f32
    %107 = vector.broadcast %cst_54 : f32 to vector<8x1xf32>
    %108 = arith.addf %104, %107 : vector<8x1xf32>
    %109 = math.rsqrt %108 : vector<8x1xf32>
    %110 = vector.broadcast %109 : vector<8x1xf32> to vector<8x32xf32>
    %111 = arith.mulf %106, %110 : vector<8x32xf32>
    %112 = vector.broadcast %92 : vector<1x32xf32> to vector<8x32xf32>
    %113 = arith.mulf %111, %112 : vector<8x32xf32>
    %114 = vector.broadcast %93 : vector<1x32xf32> to vector<8x32xf32>
    %115 = arith.addf %113, %114 : vector<8x32xf32>
    %c0_55 = arith.constant 0 : index
    %c0_56 = arith.constant 0 : index
    %c0_57 = arith.constant 0 : index
    %116 = vector.load %arg18[%c0_55, %c0_56, %c0_57] : memref<1x8x32xf32, #tpu.memory_space<vmem>>, vector<1x8x32xf32>
    %117 = vector.shape_cast %116 : vector<1x8x32xf32> to vector<8x32xf32>
    %118 = vector.shape_cast %115 : vector<8x32xf32> to vector<1x8x32xf32>
    tpu.vector_store %arg18[%c0_55, %c0_56, %c0_57], %118 {strides = array<i32>} : memref<1x8x32xf32, #tpu.memory_space<vmem>>, vector<1x8x32xf32>,
    return
  }
  func.func @transform_0(%arg0: i32, %arg1: i32) -> (i32, i32, i32) {
    %c0_i32 = arith.constant 0 : i32
    %c0_i32_0 = arith.constant 0 : i32
    %c0_i32_1 = arith.constant 0 : i32
    return %arg0, %c0_i32, %c0_i32_0 : i32, i32, i32
  }
  func.func @transform_1(%arg0: i32, %arg1: i32) -> (i32, i32, i32) {
    %c0_i32 = arith.constant 0 : i32
    %c0_i32_0 = arith.constant 0 : i32
    %c0_i32_1 = arith.constant 0 : i32
    return %arg0, %c0_i32, %c0_i32_0 : i32, i32, i32
  }
  func.func @transform_2(%arg0: i32, %arg1: i32) -> (i32, i32) {
    %c0_i32 = arith.constant 0 : i32
    %c0_i32_0 = arith.constant 0 : i32
    %c0_i32_1 = arith.constant 0 : i32
    return %c0_i32, %c0_i32_0 : i32, i32
  }
  func.func @transform_3(%arg0: i32, %arg1: i32) -> (i32, i32) {
    %c0_i32 = arith.constant 0 : i32
    %c0_i32_0 = arith.constant 0 : i32
    %c0_i32_1 = arith.constant 0 : i32
    return %c0_i32, %c0_i32_0 : i32, i32
  }
  func.func @transform_4(%arg0: i32, %arg1: i32) -> (i32, i32) {
    %c0_i32 = arith.constant 0 : i32
    %c0_i32_0 = arith.constant 0 : i32
    %c0_i32_1 = arith.constant 0 : i32
    return %c0_i32, %c0_i32_0 : i32, i32
  }
  func.func @transform_5(%arg0: i32, %arg1: i32) -> (i32, i32) {
    %c0_i32 = arith.constant 0 : i32
    %c0_i32_0 = arith.constant 0 : i32
    %c0_i32_1 = arith.constant 0 : i32
    return %c0_i32, %c0_i32_0 : i32, i32
  }
  func.func @transform_6(%arg0: i32, %arg1: i32) -> (i32, i32) {
    %c0_i32 = arith.constant 0 : i32
    %c0_i32_0 = arith.constant 0 : i32
    %c0_i32_1 = arith.constant 0 : i32
    return %c0_i32, %c0_i32_0 : i32, i32
  }
  func.func @transform_7(%arg0: i32, %arg1: i32) -> (i32, i32) {
    %c0_i32 = arith.constant 0 : i32
    %c0_i32_0 = arith.constant 0 : i32
    %c0_i32_1 = arith.constant 0 : i32
    return %c0_i32, %c0_i32_0 : i32, i32
  }
  func.func @transform_8(%arg0: i32, %arg1: i32) -> (i32, i32) {
    %c0_i32 = arith.constant 0 : i32
    %c0_i32_0 = arith.constant 0 : i32
    %c0_i32_1 = arith.constant 0 : i32
    return %c0_i32, %c0_i32_0 : i32, i32
  }
  func.func @transform_9(%arg0: i32, %arg1: i32) -> (i32, i32) {
    %c0_i32 = arith.constant 0 : i32
    %c0_i32_0 = arith.constant 0 : i32
    %c0_i32_1 = arith.constant 0 : i32
    return %c0_i32, %c0_i32_0 : i32, i32
  }
  func.func @transform_10(%arg0: i32, %arg1: i32) -> (i32, i32) {
    %c0_i32 = arith.constant 0 : i32
    %c0_i32_0 = arith.constant 0 : i32
    %c0_i32_1 = arith.constant 0 : i32
    return %c0_i32, %c0_i32_0 : i32, i32
  }
  func.func @transform_11(%arg0: i32, %arg1: i32) -> (i32, i32) {
    %c0_i32 = arith.constant 0 : i32
    %c0_i32_0 = arith.constant 0 : i32
    %c0_i32_1 = arith.constant 0 : i32
    return %c0_i32, %c0_i32_0 : i32, i32
  }
  func.func @transform_12(%arg0: i32, %arg1: i32) -> (i32, i32) {
    %c0_i32 = arith.constant 0 : i32
    %c0_i32_0 = arith.constant 0 : i32
    %c0_i32_1 = arith.constant 0 : i32
    return %c0_i32, %c0_i32_0 : i32, i32
  }
  func.func @transform_13(%arg0: i32, %arg1: i32) -> (i32, i32) {
    %c0_i32 = arith.constant 0 : i32
    %c0_i32_0 = arith.constant 0 : i32
    %c0_i32_1 = arith.constant 0 : i32
    return %c0_i32, %c0_i32_0 : i32, i32
  }
  func.func @transform_14(%arg0: i32, %arg1: i32) -> (i32, i32) {
    %c0_i32 = arith.constant 0 : i32
    %c0_i32_0 = arith.constant 0 : i32
    %c0_i32_1 = arith.constant 0 : i32
    return %c0_i32, %c0_i32_0 : i32, i32
  }
  func.func @transform_15(%arg0: i32, %arg1: i32) -> (i32, i32) {
    %c0_i32 = arith.constant 0 : i32
    %c0_i32_0 = arith.constant 0 : i32
    %c0_i32_1 = arith.constant 0 : i32
    return %c0_i32, %c0_i32_0 : i32, i32
  }
  func.func @transform_16(%arg0: i32, %arg1: i32) -> (i32, i32, i32) {
    %c0_i32 = arith.constant 0 : i32
    %c0_i32_0 = arith.constant 0 : i32
    return %arg0, %arg1, %c0_i32 : i32, i32, i32
  }
}

module attributes {stable_mosaic.version = 11 : i64} {
  func.func @_bert_layer_kernel(%arg0: i32, %arg1: i32, %arg2: memref<1x8x32xf32, #tpu.memory_space<vmem>>, %arg3: memref<1x1x8xf32, #tpu.memory_space<vmem>>, %arg4: memref<32x32xbf16, #tpu.memory_space<vmem>>, %arg5: memref<32x1xf32, #tpu.memory_space<vmem>>, %arg6: memref<64x32xbf16, #tpu.memory_space<vmem>>, %arg7: memref<64x1xf32, #tpu.memory_space<vmem>>, %arg8: memref<32x32xbf16, #tpu.memory_space<vmem>>, %arg9: memref<1x32xf32, #tpu.memory_space<vmem>>, %arg10: memref<1x32xf32, #tpu.memory_space<vmem>>, %arg11: memref<1x32xf32, #tpu.memory_space<vmem>>, %arg12: memref<32x64xbf16, #tpu.memory_space<vmem>>, %arg13: memref<1x64xf32, #tpu.memory_space<vmem>>, %arg14: memref<64x32xbf16, #tpu.memory_space<vmem>>, %arg15: memref<1x32xf32, #tpu.memory_space<vmem>>, %arg16: memref<1x32xf32, #tpu.memory_space<vmem>>, %arg17: memref<1x32xf32, #tpu.memory_space<vmem>>, %arg18: memref<1x8x32xf32, #tpu.memory_space<vmem>>, %arg19: memref<4x8x8xbf16, #tpu.memory_space<vmem>>, %arg20: memref<4x8x8xbf16, #tpu.memory_space<vmem>>) attributes {dimension_semantics = [#tpu.dimension_semantics<parallel>, #tpu.dimension_semantics<arbitrary>], iteration_bounds = array<i64: 4, 1>, scalar_prefetch = 0 : i64, scratch_operands = 2 : i64, tpu.core_type = #tpu.core_type<tc>, window_params = [{transform_indices = @transform_0, window_bounds = array<i64: 1, 8, 32>}, {transform_indices = @transform_1, window_bounds = array<i64: 1, 1, 8>}, {pipeline_mode = #tpu.pipeline_mode<synchronous>, transform_indices = @transform_2, window_bounds = array<i64: 32, 32>}, {pipeline_mode = #tpu.pipeline_mode<synchronous>, transform_indices = @transform_3, window_bounds = array<i64: 32, 1>}, {pipeline_mode = #tpu.pipeline_mode<synchronous>, transform_indices = @transform_4, window_bounds = array<i64: 64, 32>}, {pipeline_mode = #tpu.pipeline_mode<synchronous>, transform_indices = @transform_5, window_bounds = array<i64: 64, 1>}, {pipeline_mode = #tpu.pipeline_mode<synchronous>, transform_indices = @transform_6, window_bounds = array<i64: 32, 32>}, {pipeline_mode = #tpu.pipeline_mode<synchronous>, transform_indices = @transform_7, window_bounds = array<i64: 1, 32>}, {pipeline_mode = #tpu.pipeline_mode<synchronous>, transform_indices = @transform_8, window_bounds = array<i64: 1, 32>}, {pipeline_mode = #tpu.pipeline_mode<synchronous>, transform_indices = @transform_9, window_bounds = array<i64: 1, 32>}, {pipeline_mode = #tpu.pipeline_mode<synchronous>, transform_indices = @transform_10, window_bounds = array<i64: 32, 64>}, {pipeline_mode = #tpu.pipeline_mode<synchronous>, transform_indices = @transform_11, window_bounds = array<i64: 1, 64>}, {pipeline_mode = #tpu.pipeline_mode<synchronous>, transform_indices = @transform_12, window_bounds = array<i64: 64, 32>}, {pipeline_mode = #tpu.pipeline_mode<synchronous>, transform_indices = @transform_13, window_bounds = array<i64: 1, 32>}, {pipeline_mode = #tpu.pipeline_mode<synchronous>, transform_indices = @transform_14, window_bounds = array<i64: 1, 32>}, {pipeline_mode = #tpu.pipeline_mode<synchronous>, transform_indices = @transform_15, window_bounds = array<i64: 1, 32>}, {transform_indices = @transform_16, window_bounds = array<i64: 1, 8, 32>}]} {
    %c0_i32 = arith.constant 0 : i32
    %0 = arith.cmpi eq, %arg1, %c0_i32 : i32
    %1 = arith.extui %0 : i1 to i32
    %c0_i32_0 = arith.constant 0 : i32
    %2 = arith.cmpi ne, %1, %c0_i32_0 : i32
    scf.if %2 {
      %c0_58 = arith.constant 0 : index
      %c0_59 = arith.constant 0 : index
      %c0_60 = arith.constant 0 : index
      %119 = vector.load %arg2[%c0_58, %c0_59, %c0_60] : memref<1x8x32xf32, #tpu.memory_space<vmem>>, vector<1x8x32xf32>
      %120 = vector.shape_cast %119 : vector<1x8x32xf32> to vector<8x32xf32>
      %121 = arith.truncf %120 : vector<8x32xf32> to vector<8x32xbf16>
      %c0_61 = arith.constant 0 : index
      %c0_62 = arith.constant 0 : index
      %122 = vector.load %arg6[%c0_61, %c0_62] : memref<64x32xbf16, #tpu.memory_space<vmem>>, vector<64x32xbf16>
      %cst_63 = arith.constant dense<0.000000e+00> : vector<64x8xf32>
      %123 = tpu.matmul %122, %121, %cst_63 {dimension_numbers = #tpu.dot_dimension_numbers<[1], [1], [0], [0], [0, 0, 1, 0], [], []>} : vector<64x32xbf16>, vector<8x32xbf16>, vector<64x8xf32> -> vector<64x8xf32>
      %c0_64 = arith.constant 0 : index
      %c0_65 = arith.constant 0 : index
      %124 = vector.load %arg7[%c0_64, %c0_65] : memref<64x1xf32, #tpu.memory_space<vmem>>, vector<64x1xf32>
      %125 = vector.broadcast %124 : vector<64x1xf32> to vector<64x8xf32>
      %126 = arith.addf %123, %125 : vector<64x8xf32>
      %127 = vector.extract_strided_slice %126 {offsets = [0, 0], sizes = [32, 8], strides = [1, 1]} : vector<64x8xf32> to vector<32x8xf32>
      %128 = arith.truncf %127 : vector<32x8xf32> to vector<32x8xbf16>
      %129 = vector.extract_strided_slice %126 {offsets = [32, 0], sizes = [32, 8], strides = [1, 1]} : vector<64x8xf32> to vector<32x8xf32>
      %130 = arith.truncf %129 : vector<32x8xf32> to vector<32x8xbf16>
      %131 = vector.shape_cast %128 : vector<32x8xbf16> to vector<4x8x8xbf16>
      %c0_66 = arith.constant 0 : index
      %c0_67 = arith.constant 0 : index
      %c0_68 = arith.constant 0 : index
      %132 = vector.load %arg19[%c0_66, %c0_67, %c0_68] : memref<4x8x8xbf16, #tpu.memory_space<vmem>>, vector<4x8x8xbf16>
      tpu.vector_store %arg19[%c0_66, %c0_67, %c0_68], %131 {strides = array<i32>} : memref<4x8x8xbf16, #tpu.memory_space<vmem>>, vector<4x8x8xbf16>,
      %133 = vector.shape_cast %130 : vector<32x8xbf16> to vector<4x8x8xbf16>
      %134 = tpu.transpose %133, [0, 2, 1] : vector<4x8x8xbf16> -> vector<4x8x8xbf16>
      %c0_69 = arith.constant 0 : index
      %c0_70 = arith.constant 0 : index
      %c0_71 = arith.constant 0 : index
      %135 = vector.load %arg20[%c0_69, %c0_70, %c0_71] : memref<4x8x8xbf16, #tpu.memory_space<vmem>>, vector<4x8x8xbf16>
      tpu.vector_store %arg20[%c0_69, %c0_70, %c0_71], %134 {strides = array<i32>} : memref<4x8x8xbf16, #tpu.memory_space<vmem>>, vector<4x8x8xbf16>,
    } else {
    }
    %c8_i32 = arith.constant 8 : i32
    %3 = arith.muli %arg1, %c8_i32 : i32
    %4 = tpu.assume_multiple %3, 8 : i32
    %c0 = arith.constant 0 : index
    %5 = arith.index_cast %4 : i32 to index
    %c0_1 = arith.constant 0 : index
    %6 = vector.load %arg2[%c0, %5, %c0_1] : memref<1x8x32xf32, #tpu.memory_space<vmem>>, vector<1x8x32xf32>
    %7 = vector.shape_cast %6 : vector<1x8x32xf32> to vector<8x32xf32>
    %8 = arith.truncf %7 : vector<8x32xf32> to vector<8x32xbf16>
    %c0_2 = arith.constant 0 : index
    %c0_3 = arith.constant 0 : index
    %9 = vector.load %arg4[%c0_2, %c0_3] : memref<32x32xbf16, #tpu.memory_space<vmem>>, vector<32x32xbf16>
    %cst = arith.constant dense<0.000000e+00> : vector<32x8xf32>
    %10 = tpu.matmul %9, %8, %cst {dimension_numbers = #tpu.dot_dimension_numbers<[1], [1], [0], [0], [0, 0, 1, 0], [], []>} : vector<32x32xbf16>, vector<8x32xbf16>, vector<32x8xf32> -> vector<32x8xf32>
    %c0_4 = arith.constant 0 : index
    %c0_5 = arith.constant 0 : index
    %11 = vector.load %arg5[%c0_4, %c0_5] : memref<32x1xf32, #tpu.memory_space<vmem>>, vector<32x1xf32>
    %12 = vector.broadcast %11 : vector<32x1xf32> to vector<32x8xf32>
    %13 = arith.addf %10, %12 : vector<32x8xf32>
    %14 = arith.truncf %13 : vector<32x8xf32> to vector<32x8xbf16>
    %15 = vector.shape_cast %14 : vector<32x8xbf16> to vector<4x8x8xbf16>
    %16 = tpu.transpose %15, [0, 2, 1] : vector<4x8x8xbf16> -> vector<4x8x8xbf16>
    %c0_6 = arith.constant 0 : index
    %c0_7 = arith.constant 0 : index
    %c0_8 = arith.constant 0 : index
    %17 = vector.load %arg19[%c0_6, %c0_7, %c0_8] : memref<4x8x8xbf16, #tpu.memory_space<vmem>>, vector<4x8x8xbf16>
    %cst_9 = arith.constant dense<0.000000e+00> : vector<4x8x8xf32>
    %18 = tpu.matmul %16, %17, %cst_9 {dimension_numbers = #tpu.dot_dimension_numbers<[2], [1], [1], [2], [0, 0, 0, 1, 1, 2], [0], [0]>} : vector<4x8x8xbf16>, vector<4x8x8xbf16>, vector<4x8x8xf32> -> vector<4x8x8xf32>
    %c0_10 = arith.constant 0 : index
    %c0_11 = arith.constant 0 : index
    %c0_12 = arith.constant 0 : index
    %19 = vector.load %arg3[%c0_10, %c0_11, %c0_12] : memref<1x1x8xf32, #tpu.memory_space<vmem>>, vector<1x1x8xf32>
    %20 = vector.shape_cast %19 : vector<1x1x8xf32> to vector<1x8xf32>
    %21 = vector.shape_cast %20 : vector<1x8xf32> to vector<1x1x8xf32>
    %22 = vector.broadcast %21 : vector<1x1x8xf32> to vector<4x8x8xf32>
    %23 = arith.addf %18, %22 : vector<4x8x8xf32>
    %cst_13 = arith.constant dense<0xFF800000> : vector<4x8xf32>
    %24 = vector.multi_reduction <maximumf>, %23, %cst_13 [2] : vector<4x8x8xf32> to vector<4x8xf32>
    %25 = vector.shape_cast %24 : vector<4x8xf32> to vector<4x8x1xf32>
    %26 = vector.broadcast %25 : vector<4x8x1xf32> to vector<4x8x8xf32>
    %27 = arith.subf %23, %26 : vector<4x8x8xf32>
    %28 = math.exp %27 : vector<4x8x8xf32>
    %cst_14 = arith.constant dense<0.000000e+00> : vector<4x8xf32>
    %29 = vector.multi_reduction <add>, %28, %cst_14 [2] : vector<4x8x8xf32> to vector<4x8xf32>
    %30 = vector.shape_cast %29 : vector<4x8xf32> to vector<4x8x1xf32>
    %31 = tpu.reciprocal %30 {approx = true} : vector<4x8x1xf32> -> vector<4x8x1xf32>
    %32 = vector.broadcast %31 : vector<4x8x1xf32> to vector<4x8x8xf32>
    %33 = arith.mulf %28, %32 : vector<4x8x8xf32>
    %34 = arith.truncf %33 : vector<4x8x8xf32> to vector<4x8x8xbf16>
    %c0_15 = arith.constant 0 : index
    %c0_16 = arith.constant 0 : index
    %c0_17 = arith.constant 0 : index
    %35 = vector.load %arg20[%c0_15, %c0_16, %c0_17] : memref<4x8x8xbf16, #tpu.memory_space<vmem>>, vector<4x8x8xbf16>
    %cst_18 = arith.constant dense<0.000000e+00> : vector<4x8x8xf32>
    %36 = tpu.matmul %34, %35, %cst_18 {dimension_numbers = #tpu.dot_dimension_numbers<[2], [1], [1], [2], [0, 0, 0, 1, 1, 2], [0], [0]>} : vector<4x8x8xbf16>, vector<4x8x8xbf16>, vector<4x8x8xf32> -> vector<4x8x8xf32>
    %37 = arith.truncf %36 : vector<4x8x8xf32> to vector<4x8x8xbf16>
    %38 = tpu.transpose %37, [0, 2, 1] : vector<4x8x8xbf16> -> vector<4x8x8xbf16>
    %39 = vector.shape_cast %38 : vector<4x8x8xbf16> to vector<32x8xbf16>
    %40 = tpu.transpose %39, [1, 0] : vector<32x8xbf16> -> vector<8x32xbf16>
    %c0_19 = arith.constant 0 : index
    %c0_20 = arith.constant 0 : index
    %41 = vector.load %arg8[%c0_19, %c0_20] : memref<32x32xbf16, #tpu.memory_space<vmem>>, vector<32x32xbf16>
    %cst_21 = arith.constant dense<0.000000e+00> : vector<8x32xf32>
    %42 = tpu.matmul %40, %41, %cst_21 {dimension_numbers = #tpu.dot_dimension_numbers<[1], [0], [0], [1], [0, 0, 1, 1], [], []>} : vector<8x32xbf16>, vector<32x32xbf16>, vector<8x32xf32> -> vector<8x32xf32>
    %c0_22 = arith.constant 0 : index
    %c0_23 = arith.constant 0 : index
    %43 = vector.load %arg9[%c0_22, %c0_23] : memref<1x32xf32, #tpu.memory_space<vmem>>, vector<1x32xf32>
    %44 = vector.broadcast %43 : vector<1x32xf32> to vector<8x32xf32>
    %45 = arith.addf %42, %44 : vector<8x32xf32>
    %46 = arith.addf %45, %7 : vector<8x32xf32>
    %c0_24 = arith.constant 0 : index
    %c0_25 = arith.constant 0 : index
    %47 = vector.load %arg10[%c0_24, %c0_25] : memref<1x32xf32, #tpu.memory_space<vmem>>, vector<1x32xf32>
    %c0_26 = arith.constant 0 : index
    %c0_27 = arith.constant 0 : index
    %48 = vector.load %arg11[%c0_26, %c0_27] : memref<1x32xf32, #tpu.memory_space<vmem>>, vector<1x32xf32>
    %cst_28 = arith.constant dense<0.000000e+00> : vector<8xf32>
    %49 = vector.multi_reduction <add>, %46, %cst_28 [1] : vector<8x32xf32> to vector<8xf32>
    %50 = vector.shape_cast %49 : vector<8xf32> to vector<8x1xf32>
    %cst_29 = arith.constant 3.200000e+01 : f32
    %51 = vector.broadcast %cst_29 : f32 to vector<8x1xf32>
    %52 = arith.divf %50, %51 : vector<8x1xf32>
    %53 = vector.broadcast %52 : vector<8x1xf32> to vector<8x32xf32>
    %54 = arith.subf %46, %53 : vector<8x32xf32>
    %55 = arith.mulf %54, %54 : vector<8x32xf32>
    %cst_30 = arith.constant dense<0.000000e+00> : vector<8xf32>
    %56 = vector.multi_reduction <add>, %55, %cst_30 [1] : vector<8x32xf32> to vector<8xf32>
    %57 = vector.shape_cast %56 : vector<8xf32> to vector<8x1xf32>
    %cst_31 = arith.constant 3.200000e+01 : f32
    %58 = vector.broadcast %cst_31 : f32 to vector<8x1xf32>
    %59 = arith.divf %57, %58 : vector<8x1xf32>
    %60 = vector.broadcast %52 : vector<8x1xf32> to vector<8x32xf32>
    %61 = arith.subf %46, %60 : vector<8x32xf32>
    %cst_32 = arith.constant 9.99999996E-13 : f32
    %62 = vector.broadcast %cst_32 : f32 to vector<8x1xf32>
    %63 = arith.addf %59, %62 : vector<8x1xf32>
    %64 = math.rsqrt %63 : vector<8x1xf32>
    %65 = vector.broadcast %64 : vector<8x1xf32> to vector<8x32xf32>
    %66 = arith.mulf %61, %65 : vector<8x32xf32>
    %67 = vector.broadcast %47 : vector<1x32xf32> to vector<8x32xf32>
    %68 = arith.mulf %66, %67 : vector<8x32xf32>
    %69 = vector.broadcast %48 : vector<1x32xf32> to vector<8x32xf32>
    %70 = arith.addf %68, %69 : vector<8x32xf32>
    %71 = arith.truncf %70 : vector<8x32xf32> to vector<8x32xbf16>
    %c0_33 = arith.constant 0 : index
    %c0_34 = arith.constant 0 : index
    %72 = vector.load %arg12[%c0_33, %c0_34] : memref<32x64xbf16, #tpu.memory_space<vmem>>, vector<32x64xbf16>
    %cst_35 = arith.constant dense<0.000000e+00> : vector<8x64xf32>
    %73 = tpu.matmul %71, %72, %cst_35 {dimension_numbers = #tpu.dot_dimension_numbers<[1], [0], [0], [1], [0, 0, 1, 1], [], []>} : vector<8x32xbf16>, vector<32x64xbf16>, vector<8x64xf32> -> vector<8x64xf32>
    %c0_36 = arith.constant 0 : index
    %c0_37 = arith.constant 0 : index
    %74 = vector.load %arg13[%c0_36, %c0_37] : memref<1x64xf32, #tpu.memory_space<vmem>>, vector<1x64xf32>
    %75 = vector.broadcast %74 : vector<1x64xf32> to vector<8x64xf32>
    %76 = arith.addf %73, %75 : vector<8x64xf32>
    %cst_38 = arith.constant 5.000000e-01 : f32
    %77 = vector.broadcast %cst_38 : f32 to vector<8x64xf32>
    %78 = arith.mulf %77, %76 : vector<8x64xf32>
    %cst_39 = arith.constant 0.707106769 : f32
    %79 = vector.broadcast %cst_39 : f32 to vector<8x64xf32>
    %80 = arith.mulf %76, %79 : vector<8x64xf32>
    %81 = math.erf %80 : vector<8x64xf32>
    %cst_40 = arith.constant 1.000000e+00 : f32
    %82 = vector.broadcast %cst_40 : f32 to vector<8x64xf32>
    %83 = arith.addf %82, %81 : vector<8x64xf32>
    %84 = arith.mulf %78, %83 : vector<8x64xf32>
    %85 = arith.truncf %84 : vector<8x64xf32> to vector<8x64xbf16>
    %c0_41 = arith.constant 0 : index
    %c0_42 = arith.constant 0 : index
    %86 = vector.load %arg14[%c0_41, %c0_42] : memref<64x32xbf16, #tpu.memory_space<vmem>>, vector<64x32xbf16>
    %cst_43 = arith.constant dense<0.000000e+00> : vector<8x32xf32>
    %87 = tpu.matmul %85, %86, %cst_43 {dimension_numbers = #tpu.dot_dimension_numbers<[1], [0], [0], [1], [0, 0, 1, 1], [], []>} : vector<8x64xbf16>, vector<64x32xbf16>, vector<8x32xf32> -> vector<8x32xf32>
    %c0_44 = arith.constant 0 : index
    %c0_45 = arith.constant 0 : index
    %88 = vector.load %arg15[%c0_44, %c0_45] : memref<1x32xf32, #tpu.memory_space<vmem>>, vector<1x32xf32>
    %89 = vector.broadcast %88 : vector<1x32xf32> to vector<8x32xf32>
    %90 = arith.addf %87, %89 : vector<8x32xf32>
    %91 = arith.addf %90, %70 : vector<8x32xf32>
    %c0_46 = arith.constant 0 : index
    %c0_47 = arith.constant 0 : index
    %92 = vector.load %arg16[%c0_46, %c0_47] : memref<1x32xf32, #tpu.memory_space<vmem>>, vector<1x32xf32>
    %c0_48 = arith.constant 0 : index
    %c0_49 = arith.constant 0 : index
    %93 = vector.load %arg17[%c0_48, %c0_49] : memref<1x32xf32, #tpu.memory_space<vmem>>, vector<1x32xf32>
    %cst_50 = arith.constant dense<0.000000e+00> : vector<8xf32>
    %94 = vector.multi_reduction <add>, %91, %cst_50 [1] : vector<8x32xf32> to vector<8xf32>
    %95 = vector.shape_cast %94 : vector<8xf32> to vector<8x1xf32>
    %cst_51 = arith.constant 3.200000e+01 : f32
    %96 = vector.broadcast %cst_51 : f32 to vector<8x1xf32>
    %97 = arith.divf %95, %96 : vector<8x1xf32>
    %98 = vector.broadcast %97 : vector<8x1xf32> to vector<8x32xf32>
    %99 = arith.subf %91, %98 : vector<8x32xf32>
    %100 = arith.mulf %99, %99 : vector<8x32xf32>
    %cst_52 = arith.constant dense<0.000000e+00> : vector<8xf32>
    %101 = vector.multi_reduction <add>, %100, %cst_52 [1] : vector<8x32xf32> to vector<8xf32>
    %102 = vector.shape_cast %101 : vector<8xf32> to vector<8x1xf32>
    %cst_53 = arith.constant 3.200000e+01 : f32
    %103 = vector.broadcast %cst_53 : f32 to vector<8x1xf32>
    %104 = arith.divf %102, %103 : vector<8x1xf32>
    %105 = vector.broadcast %97 : vector<8x1xf32> to vector<8x32xf32>
    %106 = arith.subf %91, %105 : vector<8x32xf32>
    %cst_54 = arith.constant 9.99999996E-13 : f32
    %107 = vector.broadcast %cst_54 : f32 to vector<8x1xf32>
    %108 = arith.addf %104, %107 : vector<8x1xf32>
    %109 = math.rsqrt %108 : vector<8x1xf32>
    %110 = vector.broadcast %109 : vector<8x1xf32> to vector<8x32xf32>
    %111 = arith.mulf %106, %110 : vector<8x32xf32>
    %112 = vector.broadcast %92 : vector<1x32xf32> to vector<8x32xf32>
    %113 = arith.mulf %111, %112 : vector<8x32xf32>
    %114 = vector.broadcast %93 : vector<1x32xf32> to vector<8x32xf32>
    %115 = arith.addf %113, %114 : vector<8x32xf32>
    %c0_55 = arith.constant 0 : index
    %c0_56 = arith.constant 0 : index
    %c0_57 = arith.constant 0 : index
    %116 = vector.load %arg18[%c0_55, %c0_56, %c0_57] : memref<1x8x32xf32, #tpu.memory_space<vmem>>, vector<1x8x32xf32>
    %117 = vector.shape_cast %116 : vector<1x8x32xf32> to vector<8x32xf32>
    %118 = vector.shape_cast %115 : vector<8x32xf32> to vector<1x8x32xf32>
    tpu.vector_store %arg18[%c0_55, %c0_56, %c0_57], %118 {strides = array<i32>} : memref<1x8x32xf32, #tpu.memory_space<vmem>>, vector<1x8x32xf32>,
    return
  }
  func.func @transform_0(%arg0: i32, %arg1: i32) -> (i32, i32, i32) {
    %c0_i32 = arith.constant 0 : i32
    %c0_i32_0 = arith.constant 0 : i32
    %c0_i32_1 = arith.constant 0 : i32
    return %arg0, %c0_i32, %c0_i32_0 : i32, i32, i32
  }
  func.func @transform_1(%arg0: i32, %arg1: i32) -> (i32, i32, i32) {
    %c0_i32 = arith.constant 0 : i32
    %c0_i32_0 = arith.constant 0 : i32
    %c0_i32_1 = arith.constant 0 : i32
    return %arg0, %c0_i32, %c0_i32_0 : i32, i32, i32
  }
  func.func @transform_2(%arg0: i32, %arg1: i32) -> (i32, i32) {
    %c0_i32 = arith.constant 0 : i32
    %c0_i32_0 = arith.constant 0 : i32
    %c0_i32_1 = arith.constant 0 : i32
    return %c0_i32, %c0_i32_0 : i32, i32
  }
  func.func @transform_3(%arg0: i32, %arg1: i32) -> (i32, i32) {
    %c0_i32 = arith.constant 0 : i32
    %c0_i32_0 = arith.constant 0 : i32
    %c0_i32_1 = arith.constant 0 : i32
    return %c0_i32, %c0_i32_0 : i32, i32
  }
  func.func @transform_4(%arg0: i32, %arg1: i32) -> (i32, i32) {
    %c0_i32 = arith.constant 0 : i32
    %c0_i32_0 = arith.constant 0 : i32
    %c0_i32_1 = arith.constant 0 : i32
    return %c0_i32, %c0_i32_0 : i32, i32
  }
  func.func @transform_5(%arg0: i32, %arg1: i32) -> (i32, i32) {
    %c0_i32 = arith.constant 0 : i32
    %c0_i32_0 = arith.constant 0 : i32
    %c0_i32_1 = arith.constant 0 : i32
    return %c0_i32, %c0_i32_0 : i32, i32
  }
  func.func @transform_6(%arg0: i32, %arg1: i32) -> (i32, i32) {
    %c0_i32 = arith.constant 0 : i32
    %c0_i32_0 = arith.constant 0 : i32
    %c0_i32_1 = arith.constant 0 : i32
    return %c0_i32, %c0_i32_0 : i32, i32
  }
  func.func @transform_7(%arg0: i32, %arg1: i32) -> (i32, i32) {
    %c0_i32 = arith.constant 0 : i32
    %c0_i32_0 = arith.constant 0 : i32
    %c0_i32_1 = arith.constant 0 : i32
    return %c0_i32, %c0_i32_0 : i32, i32
  }
  func.func @transform_8(%arg0: i32, %arg1: i32) -> (i32, i32) {
    %c0_i32 = arith.constant 0 : i32
    %c0_i32_0 = arith.constant 0 : i32
    %c0_i32_1 = arith.constant 0 : i32
    return %c0_i32, %c0_i32_0 : i32, i32
  }
  func.func @transform_9(%arg0: i32, %arg1: i32) -> (i32, i32) {
    %c0_i32 = arith.constant 0 : i32
    %c0_i32_0 = arith.constant 0 : i32
    %c0_i32_1 = arith.constant 0 : i32
    return %c0_i32, %c0_i32_0 : i32, i32
  }
  func.func @transform_10(%arg0: i32, %arg1: i32) -> (i32, i32) {
    %c0_i32 = arith.constant 0 : i32
    %c0_i32_0 = arith.constant 0 : i32
    %c0_i32_1 = arith.constant 0 : i32
    return %c0_i32, %c0_i32_0 : i32, i32
  }
  func.func @transform_11(%arg0: i32, %arg1: i32) -> (i32, i32) {
    %c0_i32 = arith.constant 0 : i32
    %c0_i32_0 = arith.constant 0 : i32
    %c0_i32_1 = arith.constant 0 : i32
    return %c0_i32, %c0_i32_0 : i32, i32
  }
  func.func @transform_12(%arg0: i32, %arg1: i32) -> (i32, i32) {
    %c0_i32 = arith.constant 0 : i32
    %c0_i32_0 = arith.constant 0 : i32
    %c0_i32_1 = arith.constant 0 : i32
    return %c0_i32, %c0_i32_0 : i32, i32
  }
  func.func @transform_13(%arg0: i32, %arg1: i32) -> (i32, i32) {
    %c0_i32 = arith.constant 0 : i32
    %c0_i32_0 = arith.constant 0 : i32
    %c0_i32_1 = arith.constant 0 : i32
    return %c0_i32, %c0_i32_0 : i32, i32
  }
  func.func @transform_14(%arg0: i32, %arg1: i32) -> (i32, i32) {
    %c0_i32 = arith.constant 0 : i32
    %c0_i32_0 = arith.constant 0 : i32
    %c0_i32_1 = arith.constant 0 : i32
    return %c0_i32, %c0_i32_0 : i32, i32
  }
  func.func @transform_15(%arg0: i32, %arg1: i32) -> (i32, i32) {
    %c0_i32 = arith.constant 0 : i32
    %c0_i32_0 = arith.constant 0 : i32
    %c0_i32_1 = arith.constant 0 : i32
    return %c0_i32, %c0_i32_0 : i32, i32
  }
  func.func @transform_16(%arg0: i32, %arg1: i32) -> (i32, i32, i32) {
    %c0_i32 = arith.constant 0 : i32
    %c0_i32_0 = arith.constant 0 : i32
    return %arg0, %arg1, %c0_i32 : i32, i32, i32
  }
}

</mosaic_0001>

<bundles_post_ra>
// kernel: tpu_custom_call.1
= control target key start
LH: loop header
LB: loop body
LE: loop exit
PB: predicated region body
PF: predicated region fallthrough
CT: control target
= control target key end

     0   :  { %s2690_s0 = inlined_call_operand.vmem [shape: f32[4,8,32], index: 0, kind: input, shape index: {}]   ;;  %s2691_s1 = inlined_call_operand.vmem [shape: f32[4,1,8], index: 1, kind: input, shape index: {}]   ;;  %s2692_s2 = inlined_call_operand.vmem [shape: bf16[32,32], index: 2, kind: input, shape index: {}]   ;;  %s2693_s3 = inlined_call_operand.vmem [shape: f32[32,1], index: 3, kind: input, shape index: {}]   ;;  %s2694_s4 = inlined_call_operand.vmem [shape: bf16[64,32], index: 4, kind: input, shape index: {}]   ;;  %s2695_s5 = inlined_call_operand.vmem [shape: f32[64,1], index: 5, kind: input, shape index: {}]   ;;  %s2696_s6 = inlined_call_operand.vmem [shape: bf16[32,32], index: 6, kind: input, shape index: {}]   ;;  %s2697_s7 = inlined_call_operand.vmem [shape: f32[1,32], index: 7, kind: input, shape index: {}]   ;;  %s2698_s8 = inlined_call_operand.vmem [shape: f32[1,32], index: 8, kind: input, shape index: {}]   ;;  %s2699_s9 = inlined_call_operand.vmem [shape: f32[1,32], index: 9, kind: input, shape index: {}]   ;;  %s2700_s10 = inlined_call_operand.vmem [shape: bf16[32,64], index: 10, kind: input, shape index: {}]   ;;  %s2701_s11 = inlined_call_operand.vmem [shape: f32[1,64], index: 11, kind: input, shape index: {}]   ;;  %s2702_s12 = inlined_call_operand.vmem [shape: bf16[64,32], index: 12, kind: input, shape index: {}]   ;;  %s2703_s13 = inlined_call_operand.vmem [shape: f32[1,32], index: 13, kind: input, shape index: {}]   ;;  %s2704_s14 = inlined_call_operand.vmem [shape: f32[1,32], index: 14, kind: input, shape index: {}]   ;;  %s2705_s15 = inlined_call_operand.vmem [shape: f32[1,32], index: 15, kind: input, shape index: {}]   ;;  %s2706_s16 = inlined_call_operand.hbm [shape: f32[4,8,32], index: 16, kind: output, shape index: {}]  }
   0x1   :  { %2714 = sst [smem:[#allocation14_spill]] %s2690_s0 }
   0x2   :  { %21 = vsyncpa [#allocation5], 0 }
   0x3   :  { %23 = vsyncpa [#allocation5 + $0x1], 0  ;;  %s2372_s21 = smov 0   ;;  %s2374_s22 = smov 0  }
   0x4   :  { %s2376_s23 = smov 0   ;;  %s2378_s24 = smov 0  }
   0x5   :  { %s2380_s25 = smov 0   ;;  %s2382_s26 = smov 0  }
   0x6 LB: > { %2715 = sst [smem:[#allocation7_spill]] %s2261_s21  ;;  %s1902_s27 = sadd.s32 4294967295, %s2281_s26   ;;  %s2281_s26 = sphi %s2382_s26, %s29_s26   ;;  %s2277_s25 = sphi %s2380_s25, %s2731_s25   ;;  %s2273_s24 = sphi %s2378_s24, %s2730_s24   ;;  %s2269_s23 = sphi %s2376_s23, %s2729_s23   ;;  %s2265_s22 = sphi %s2374_s22, %s2733_s22   ;;  %s2261_s21 = sphi %s2372_s21, %s2732_s21  }
   0x7   : > { %2716 = sst [smem:[#allocation8_spill]] %s2269_s23  ;;  %s1903_s28 = sadd.s32 4294967294, %s2281_s26  }
   0x8   : > { %2717 = sst [smem:[#allocation9_spill]] %s2277_s25  ;;  %s41_s29 = sadd.s32 1, %s2277_s25 }
   0x9   : > { %2718 = sst [smem:[#allocation10_spill]] %s2281_s26  ;;  %s396_s30 = sadd.s32 1, %s2269_s23 }
   0xa   : > { %p43_p0 = scmp.ge.s32.totalorder %s41_s29, 4  ;;  %p406_p1 = scmp.ne.s32.totalorder %s2269_s23, %s2265_s22 }
   0xb   : > { %p407_p2 = scmp.eq.s32.totalorder %s1902_s27, 3  ;;  %p412_p3 = scmp.ne.s32.totalorder %s2265_s22, %s2261_s21 }
   0xc   : > { %s2735_s29 = smov (%p43_p0, %s41_s29), 0  ;;  %p413_p5 = scmp.eq.s32.totalorder %s1903_s28, 3 }
   0xd   : > { %2719 = sst [smem:[#allocation11_spill]] %s2735_s29  ;;  %p2412_p4 = por %p407_p2, %p406_p1 }
   0xe   : > { %s391_s17 = ssub.s32 %s2277_s25, %s2735_s29  ;;  %p1906_p6 = scmp.ge.s32.totalorder %s2281_s26, 1 }
   0xf   : > { %p394_p7 = scmp.eq.s32.totalorder %s391_s17, 0  ;;  %p2419_p8 = por %p413_p5, %p412_p3 }
  0x10   : > { %p486_p9 = scmp.lt.s32.totalorder %s2281_s26, 5 }
  0x11   : > { %s2721_s18 = scalar_select %p2419_p8, 1, 0 }
  0x12   : > { %s2425_s19 = scalar_select %p394_p7, %s2269_s23, %s396_s30  }
  0x13   : > { %2722 = sst [smem:[#allocation12_spill]] %s2721_s18  ;;  %p487_p10 = pnand %p1906_p6, %p486_p9 }
  0x14   : > { %2723 = sst [smem:[#allocation13_spill]] %s2425_s19  ;;  %p538_p11 = scmp.lt.s32.totalorder (!%p487_p10), %s2273_s24, 3  ;;  %vm628_vm0 = vcmask (!%p487_p10), 261120   ;;  %v2167_v0 = vld [vmem:[%s2694_s4] sm:$0xff] (!%p487_p10)   ;;  %v2283_v2 = vmov (!%p487_p10), 0   ;;  %v824_v4 = vld [vmem:[%s2693_s3 + $0x10] sm:$0xff] (!%p487_p10) }
  0x15   : > { %490 = sbr.rel (%p487_p10) target bundleno = 2678 (0xa76), region = 84  ;;  %v2168_v1 = vld [vmem:[%s2692_s2] sm:$0xff] (!%p487_p10)   ;;  %2165 = vset.pattern.permute.xlu0 (!%p487_p10), %v2283_v2  ;;  %2166 = vset.pattern.permute.xlu1 (!%p487_p10), %v2283_v2  ;;  %s2724_s23 = sld [smem:[#allocation14_spill]] (!%p487_p10)  ;;  %v823_v6 = vld [vmem:[%s2693_s3 + $0x8] sm:$0xff] (!%p487_p10)  ;;  %v825_v8 = vld [vmem:[%s2693_s3 + $0x18] sm:$0xff] (!%p487_p10)  ;;  %v2284_v16 = vmov (!%p487_p10), 0.0  }
  0x16   : > { %2015 = vmatprep.mubr.msk.bf16.mxu0 (!%p487_p10), %vm628_vm0, %v2167_v0  ;;  %2025 = vmatprep.mubr.msk.bf16.mxu1 (!%p487_p10), %vm628_vm0, %v2168_v1  ;;  %v822_v3 = vld [vmem:[%s2693_s3] sm:$0xff] (!%p487_p10)  ;;  %v561_v11 = vld [vmem:[%s2695_s5 + $0x8] sm:$0xff] (!%p487_p10)  ;;  %v562_v14 = vld [vmem:[%s2695_s5 + $0x10] sm:$0xff] (!%p487_p10)  ;;  %vm2285_vm1 = vmmov (!%p487_p10), 0   ;;  %vm727_vm2 = vcmask (!%p487_p10), 60416   ;;  %vm1010_vm3 = vcmask (!%p487_p10), 1043456  }
  0x17   : > { %828 = vperm.xlu0 (!%p487_p10), %2165, %v822_v3   ;;  %838 = vperm.xlu1 (!%p487_p10), %2166, %v824_v4   ;;  %v560_v10 = vld [vmem:[%s2695_s5] sm:$0xff] (!%p487_p10)  ;;  %v2169_v12 = vld [vmem:[%s2694_s4 + $0x8] sm:$0xff] (!%p487_p10)   ;;  %v563_v15 = vld [vmem:[%s2695_s5 + $0x18] sm:$0xff] (!%p487_p10)  ;;  %vm1006_vm4 = vcmask (!%p487_p10), 64512   ;;  %vm1733_vm5 = vcmask (!%p487_p10), 523264   ;;  %s535_s27 = sand.u32 (!%p487_p10), 1, %s2265_s22  }
  0x18   : > { %v2170_v13 = vld [vmem:[%s2692_s2 + $0x8] sm:$0xff] (!%p487_p10)   ;;  %v2171_v17 = vld [vmem:[%s2694_s4 + $0x10] sm:$0xff] (!%p487_p10)   ;;  %v2172_v18 = vld [vmem:[%s2694_s4 + $0x18] sm:$0xff] (!%p487_p10)  }
  0x1b   : > { %833 = vperm.xlu0 (!%p487_p10), %2165, %v823_v6   ;;  %843 = vperm.xlu1 (!%p487_p10), %2166, %v825_v8  }
  0x1c   : > { %s2432_s28 = scalar_select %p538_p11, %s2273_s24, 3 }
  0x1e   : > { %s1908_s30 = sshll.u32 %s2432_s28, 3  ;;  %s544_s29 = scalar_lea.vmem %s2691_s1, %s2432_s28 }
  0x1f   : > { %s541_s18 = scalar_lea.vmem %s2724_s23, %s1908_s30  ;;  %570 = vperm.xlu0 %2165, %v560_v10   ;;  %575 = vperm.xlu1 %2166, %v561_v11   ;;  %v1933_v3 = vld [vmem:[%s544_s29] ss:$0 sm:$0xff]  ;;  %s1907_s29 = sshll.u32 %s535_s27, 3 }
  0x20   : > { %v2449_v5 = vld [vmem:[%s541_s18] sm:$0xff]  ;;  %s1963_s23 = sshll.u32 %s2273_s24, 7  ;;  %s537_s18 = scalar_lea.vmem [#allocation4], %s1907_s29 }
  0x21   : > { %v551_v7 = vpack.c.bf16 %v2449_v5, %v2449_v5  ;;  %s1823_s21 = sshll.u32 %s537_s18, 4  ;;  %s2642_s20 = scalar_lea.hbm %s2706_s16, %s1963_s23  ;;  %s2644_s21 = int_to_ptr.vmem [resolvable:$true] %s1823_s21 }
  0x22   : > { %s1809_s28 = scalar_lea.sflag [#allocation5], %s535_s27  ;;  %s2203_s17 = scalar_lea.vmem %s2644_s21, 128 }
  0x23   : > { %2105 = vmatprep.subr.msk.bf16.mxu0 %vm628_vm0, %v551_v7  ;;  %2106 = vmatprep.subr.msk.bf16.mxu1 %vm628_vm0, %v551_v7  ;;  %v642_v9 = vsel %vm628_vm0, %v551_v7, 0  ;;  %p2204_p12 = scmp.ne.s32.totalorder %s2644_s21, %s2203_s17  ;;  %s2286_s24 = smov [#allocation4]  }
  0x24   : > { %2014 = vmatpush3.bf16.xpose.msra.mxu0 %v642_v9  ;;  %2024 = vmatpush3.bf16.xpose.msra.mxu1 %v642_v9  ;;  %s2207_s29 = sshll.u32 %s2286_s24, 4  ;;  %s2208_s29 = int_to_ptr.vmem [resolvable:$false] %s2207_s29 }
  0x25   : > { %580 = vperm.xlu0 %2165, %v562_v14   ;;  %585 = vperm.xlu1 %2166, %v563_v15   ;;  %p2205_p13 = pnand %p2204_p12, %p2412_p4  ;;  %s2209_s25 = scalar_lea.vmem %s2208_s29, 256 }
  0x26   : > { %2029 = vmatprep.subr.bf16.mxu1 %v2284_v16  ;;  %2035 = vmatprep.subr.bf16.mxu0 %v2284_v16  ;;  %p2210_p1 = scmp.lt.s32.totalorder %s2644_s21, %s2208_s29  ;;  %p2211_p2 = scmp.lt.s32.totalorder %s2209_s25, %s2203_s17 }
  0x27   : > { %p2206_p0 = pneg %p2205_p13 }
  0x28   : > { %p2212_p3 = por %p2211_p2, %p2210_p1 }
  0x2a   : > { %p2213_p5 = pnand %p2212_p3, %p2206_p0 }
  0x2b   : > { %2016 = vmatmul.mubr.msk.bf16.vlgmr.msra.gmra.mrb[0].mxu0 %vm628_vm0, %v2169_v12  ;;  %2026 = vmatmul.mubr.msk.bf16.vlgmr.msra.gmra.mrb[0].mxu1 %vm628_vm0, %v2170_v13 }
  0x2c   : > { %2031 = vmatprep.mubr.msk.bf16.mxu1 %vm2285_vm1, %v2284_v16  ;;  %2019 = vmatprep.mubr.msk.bf16.mxu0 %vm628_vm0, %v2171_v17 }
  0x33   : > { %2020 = vmatmul.mubr.msk.bf16.gmra.mrb[4].mxu0 %vm628_vm0, %v2172_v18 }
  0x34   : > { %2037 = vmatprep.mubr.msk.bf16.mxu0 %vm2285_vm1, %v2284_v16 }
  0x96   : > { %v829_v19 = vpop.permute.xlu0 %828  ;;  %v839_v20 = vpop.permute.xlu1 %838 }
  0x9a   : > { %v834_v21 = vpop.permute.xlu0 %833  ;;  %v844_v22 = vpop.permute.xlu1 %843 }
  0x9e   : > { %v571_v23 = vpop.permute.xlu0 %570  ;;  %v576_v24 = vpop.permute.xlu1 %575 }
  0xa4   : > { %v581_v25 = vpop.permute.xlu0 %580  ;;  %v586_v26 = vpop.permute.xlu1 %585 }
  0xfe   : > { %v2017_v27 = vpop.f32.mrb[0].mxu0  ;;  %v2027_v28 = vpop.f32.mrb[0].mxu1 }
  0xff   : > { %v687_v29 = vadd.f32 %v2017_v27, %v581_v25  ;;  %v678_v30 = vpop.f32.mrb[1].mxu0  ;;  %v900_v31 = vpop.f32.mrb[1].mxu1  ;;  %v909_v36 = vadd.f32 %v2027_v28, %v839_v20  ;;  %v564_v28 = vld [vmem:[%s2695_s5 + $0x20] sm:$0xff] }
 0x100   : > { %v679_v32 = vadd.f32 %v678_v30, %v571_v23  ;;  %v901_v33 = vadd.f32 %v900_v31, %v829_v19  ;;  %v2028_v34 = vpop.f32.mrb[2].mxu1  ;;  %v2018_v35 = vpop.f32.mrb[2].mxu0 }
 0x101   : > { %v1968_v37 = vpack.c.bf16 %v687_v29, %v687_v29  ;;  %v903_v38 = vpop.f32.mrb[3].mxu1  ;;  %v690_v39 = vadd.f32 %v2018_v35, %v586_v26  ;;  %v681_v40 = vpop.f32.mrb[3].mxu0  ;;  %v1976_v48 = vpack.c.bf16 %v909_v36, %v909_v36  ;;  %v912_v49 = vadd.f32 %v2028_v34, %v844_v22  ;;  %v565_v29 = vld [vmem:[%s2695_s5 + $0x28] sm:$0xff] }
 0x102   : > { %v1966_v41 = vpack.c.bf16 %v679_v32, %v679_v32  ;;  %v1974_v42 = vpack.c.bf16 %v901_v33, %v901_v33  ;;  %v904_v43 = vadd.f32 %v903_v38, %v834_v21  ;;  %v682_v44 = vadd.f32 %v681_v40, %v576_v24  ;;  %v566_v32 = vld [vmem:[%s2695_s5 + $0x30] sm:$0xff]  ;;  %v567_v33 = vld [vmem:[%s2695_s5 + $0x38] sm:$0xff] }
 0x103   : > { %730 = vst.msk [vmem:[#allocation2 + $0x8] sm:$0xf] %vm727_vm2, %v1968_v37  ;;  %v1969_v45 = vpack.c.bf16 %v690_v39, %v690_v39  ;;  %v1977_v50 = vpack.c.bf16 %v912_v49, %v912_v49 }
 0x104   : > { %728 = vst.msk [vmem:[#allocation2] sm:$0xf] %vm727_vm2, %v1966_v41  ;;  %v1975_v46 = vpack.c.bf16 %v904_v43, %v904_v43  ;;  %931 = vxpose.xlu0.c.b16.start.end [1/1] (short) (narrow) %v1974_v42, 16  ;;  %v1967_v47 = vpack.c.bf16 %v682_v44, %v682_v44 }
 0x105   : > { %731 = vst.msk [vmem:[#allocation2 + $0xc] sm:$0xf] %vm727_vm2, %v1969_v45 }
 0x106   : > { %947 = vxpose.xlu1.c.b16.start.end [1/1] (short) (narrow) %v1975_v46, 16  ;;  %729 = vst.msk [vmem:[#allocation2 + $0x4] sm:$0xf] %vm727_vm2, %v1967_v47  ;;  %v2504_v55 = vpop.f32.mrb[4].mxu0 }
 0x107   : > { %v2506_v56 = vpop.f32.mrb[5].mxu0 }
 0x108   : > { %963 = vxpose.xlu0.c.b16.start.end [1/1] (short) (narrow) %v1976_v48, 16  ;;  %v2508_v57 = vpop.f32.mrb[6].mxu0 }
 0x109   : > { %v697_v2 = vpop.f32.mrb[7].mxu0 }
 0x10a   : > { %v997_v58 = vld [vmem:[#allocation2 + $0x8] sm:$0xf] }
 0x10b   : > { %v995_v51 = vld [vmem:[#allocation2] sm:$0xf]  ;;  %v1104_v61 = vsel %vm1010_vm3, %v997_v58, 0 }
 0x10c   : > { %979 = vxpose.xlu0.c.b16.start.end [1/1] (short) (narrow) %v1977_v50, 16  ;;  %v1012_v52 = vsel %vm1010_vm3, %v995_v51, 0  ;;  %v998_v60 = vld [vmem:[#allocation2 + $0xc] sm:$0xf] }
 0x10d   : > { %2030 = vmatpush3.bf16.msra.mxu1 %v1012_v52  ;;  %v996_v53 = vld [vmem:[#allocation2 + $0x4] sm:$0xf]  ;;  %v1150_v63 = vsel %vm1010_vm3, %v998_v60, 0 }
 0x10e   : > { %v1058_v54 = vsel %vm1010_vm3, %v996_v53, 0  ;;  %2041 = vmatprep.subr.bf16.mxu1 %v2284_v16 }
 0x10f   : > { %2036 = vmatpush3.bf16.msra.mxu0 %v1058_v54 }
 0x110   : > { %2047 = vmatprep.subr.bf16.mxu0 %v2284_v16 }
 0x16a   : > { %v939_v59 = vpop.trf.xlu0 }
 0x16b   : > { %2032 = vmatmul.mubr.msk.bf16.vlgmr.msra.gmra.mrb[4].mxu1 %vm1006_vm4, %v939_v59 }
 0x16c   : > { %2042 = vmatpush3.bf16.msra.mxu1 %v1104_v61  ;;  %v955_v62 = vpop.trf.xlu1  ;;  %2043 = vmatprep.mubr.msk.bf16.mxu1 %vm2285_vm1, %v2284_v16 }
 0x16d   : > { %2038 = vmatmul.mubr.msk.bf16.vlgmr.msra.gmra.mrb[8].mxu0 %vm1006_vm4, %v955_v62  ;;  %2053 = vmatprep.subr.bf16.mxu1 %v2284_v16 }
 0x16e   : > { %2048 = vmatpush3.bf16.msra.mxu0 %v1150_v63  ;;  %v971_v0 = vpop.trf.xlu0  ;;  %2049 = vmatprep.mubr.msk.bf16.mxu0 %vm2285_vm1, %v2284_v16 }
 0x16f   : > { %2059 = vmatprep.subr.bf16.mxu0 %v2284_v16 }
 0x172   : > { %v987_v1 = vpop.trf.xlu0 }
 0x173   : > { %2044 = vmatmul.mubr.msk.bf16.vlgmr.msra.gmra.mrb[8].mxu1 %vm1006_vm4, %v971_v0 }
 0x174   : > { %2055 = vmatprep.mubr.msk.bf16.mxu1 %vm2285_vm1, %v2284_v16 }
 0x175   : > { %2050 = vmatmul.mubr.msk.bf16.vlgmr.msra.gmra.mrb[12].mxu0 %vm1006_vm4, %v987_v1 }
 0x176   : > { %2061 = vmatprep.mubr.msk.bf16.mxu0 %vm2285_vm1, %v2284_v16 }
 0x23e   : > { %v1048_v4 = vpop.f32.mrb[4].mxu1 }
 0x23f   : > { %v1049_v6 = vadd.f32 %v1933_v3, %v1048_v4  ;;  %v2033_v7 = vpop.f32.mrb[5].mxu1 }
 0x240   : > { %v1051_v8 = vpop.f32.mrb[6].mxu1  ;;  %v1094_v9 = vpop.f32.mrb[8].mxu0 }
 0x241   : > { %v1095_v10 = vadd.f32 %v1933_v3, %v1094_v9  ;;  %v2034_v11 = vpop.f32.mrb[7].mxu1  ;;  %v1192_v12 = vsel %vm1006_vm4, %v1049_v6, -inf  ;;  %v2039_v13 = vpop.f32.mrb[9].mxu0 }
 0x242   : > { %1193 = vmax.xlane.f32.xlu1 %v1192_v12  ;;  %v1097_v14 = vpop.f32.mrb[10].mxu0 }
 0x243   : > { %v1195_v15 = vsel %vm1006_vm4, %v1095_v10, -inf  ;;  %v2040_v17 = vpop.f32.mrb[11].mxu0 }
 0x244   : > { %1196 = vmax.xlane.f32.xlu0 %v1195_v15 }
 0x246   : > { %v1140_v18 = vpop.f32.mrb[8].mxu1 }
 0x247   : > { %v2045_v19 = vpop.f32.mrb[9].mxu1  ;;  %v1141_v30 = vadd.f32 %v1933_v3, %v1140_v18 }
 0x248   : > { %v1186_v20 = vpop.f32.mrb[12].mxu0  ;;  %v1143_v21 = vpop.f32.mrb[10].mxu1 }
 0x249   : > { %v1187_v22 = vadd.f32 %v1933_v3, %v1186_v20  ;;  %v2046_v23 = vpop.f32.mrb[11].mxu1  ;;  %v2051_v24 = vpop.f32.mrb[13].mxu0  ;;  %v1198_v31 = vsel %vm1006_vm4, %v1141_v30, -inf }
 0x24a   : > { %v1189_v25 = vpop.f32.mrb[14].mxu0 }
 0x24b   : > { %v1201_v26 = vsel %vm1006_vm4, %v1187_v22, -inf  ;;  %v2052_v27 = vpop.f32.mrb[15].mxu0 }
 0x24c   : > { %1202 = vmax.xlane.f32.xlu0 %v1201_v26 }
 0x253   : > { %590 = vperm.xlu1 %2166, %v564_v28  }
 0x262   : > { %595 = vperm.xlu0 %2165, %v565_v29  }
 0x277   : > { %1199 = vmax.xlane.f32.xlu1 %v1198_v31 }
 0x288   : > { %600 = vperm.xlu1 %2166, %v566_v32  }
 0x28c   : > { %605 = vperm.xlu1 %2166, %v567_v33  }
 0x2cf   : > { %v1194_v34 = vpop.xlane.xlu1 %1193 }
 0x2d0   : > { %v1204_v41 = vsub.f32 %v1049_v6, %v1194_v34 }
 0x2d1   : > { %v1197_v35 = vpop.xlane.xlu0 %1196 }
 0x2d2   : > { %v1205_v36 = vsub.f32 %v1095_v10, %v1197_v35  ;;  %v1208_v44 = vmul.f32 1.442695, %v1204_v41 }
 0x2d3   : > { %v591_v37 = vpop.permute.xlu1 %590 }
 0x2d4   : > { %v1210_v38 = vmul.f32 1.442695, %v1205_v36  ;;  %v695_v39 = vadd.f32 %v2506_v56, %v591_v37 }
 0x2d6   : > { %v1970_v40 = vpack.c.bf16 %v695_v39, %v695_v39  ;;  %2181 = vpow2.f32 %v1210_v38 }
 0x2d7   : > { %2183 = vpow2.f32 %v1208_v44 }
 0x2d8   : > { %746 = vxpose.xlu1.c.b16.start.end [1/1] (short) (narrow) %v1970_v40, 16 }
 0x2d9   : > { %v1203_v42 = vpop.xlane.xlu0 %1202 }
 0x2da   : > { %v1207_v51 = vsub.f32 %v1187_v22, %v1203_v42  ;;  %v2173_v42 = vld [vmem:[%s2696_s6] sm:$0xff]  }
 0x2dc   : > { %v1214_v54 = vmul.f32 1.442695, %v1207_v51 }
 0x2e0   : > { %v2182_v43 = vpop.eup %2181 }
 0x2e1   : > { %v596_v45 = vpop.permute.xlu0 %595  ;;  %v1219_v48 = vsel %vm1006_vm4, %v2182_v43, 0.0  ;;  %v2184_v49 = vpop.eup %2183 }
 0x2e2   : > { %v698_v46 = vadd.f32 %v697_v2, %v596_v45  ;;  %v1216_v50 = vsel %vm1006_vm4, %v2184_v49, 0.0 }
 0x2e4   : > { %v1971_v47 = vpack.c.bf16 %v698_v46, %v698_v46 }
 0x2e5   : > { %1220 = vadd.xlane.f32.xlu1 %v1219_v48 }
 0x2e6   : > { %762 = vxpose.xlu0.c.b16.start.end [1/1] (short) (narrow) %v1971_v47, 16 }
 0x2f3   : > { %1217 = vadd.xlane.f32.xlu0 %v1216_v50 }
 0x304   : > { %v1200_v52 = vpop.xlane.xlu1 %1199 }
 0x305   : > { %v1206_v53 = vsub.f32 %v1141_v30, %v1200_v52 }
 0x307   : > { %v1212_v56 = vmul.f32 1.442695, %v1206_v53 }
 0x308   : > { %v601_v58 = vpop.permute.xlu1 %600 }
 0x309   : > { %2185 = vpow2.f32 %v1212_v56  ;;  %v703_v59 = vadd.f32 %v2504_v55, %v601_v58 }
 0x30a   : > { %2187 = vpow2.f32 %v1214_v54 }
 0x30b   : > { %v1972_v60 = vpack.c.bf16 %v703_v59, %v703_v59 }
 0x30c   : > { %v606_v1 = vpop.permute.xlu1 %605 }
 0x30d   : > { %v706_v3 = vadd.f32 %v2508_v57, %v606_v1 }
 0x30f   : > { %v1973_v4 = vpack.c.bf16 %v706_v3, %v706_v3 }
 0x312   : > { %778 = vxpose.xlu1.c.b16.start.end [1/1] (short) (narrow) %v1972_v60, 16 }
 0x313   : > { %v2186_v61 = vpop.eup %2185 }
 0x314   : > { %v1222_v62 = vsel %vm1006_vm4, %v2186_v61, 0.0  ;;  %v2188_v63 = vpop.eup %2187 }
 0x315   : > { %1223 = vadd.xlane.f32.xlu0 %v1222_v62  ;;  %v1225_v0 = vsel %vm1006_vm4, %v2188_v63, 0.0 }
 0x319   : > { %1226 = vadd.xlane.f32.xlu0 %v1225_v0 }
 0x33e   : > { %v754_v2 = vpop.trf.xlu1 }
 0x33f   : > { %810 = vst.msk [vmem:[#allocation3] sm:$0xf] %vm727_vm2, %v754_v2 }
 0x346   : > { %794 = vxpose.xlu0.c.b16.start.end [1/1] (short) (narrow) %v1973_v4, 16  ;;  %v1240_v6 = vld [vmem:[#allocation3] sm:$0xf] }
 0x347   : > { %v1248_v55 = vsel %vm1010_vm3, %v1240_v6, 0 }
 0x348   : > { %2054 = vmatpush3.bf16.msra.mxu1 %v1248_v55 }
 0x349   : > { %2065 = vmatprep.subr.bf16.mxu1 %v2284_v16 }
 0x34c   : > { %v770_v7 = vpop.trf.xlu0 }
 0x34d   : > { %811 = vst.msk [vmem:[#allocation3 + $0x4] sm:$0xf] %vm727_vm2, %v770_v7 }
 0x354   : > { %v1241_v8 = vld [vmem:[#allocation3 + $0x4] sm:$0xf] }
 0x355   : > { %v1294_v9 = vsel %vm1010_vm3, %v1241_v8, 0 }
 0x356   : > { %2060 = vmatpush3.bf16.msra.mxu0 %v1294_v9 }
 0x357   : > { %2071 = vmatprep.subr.bf16.mxu0 %v2284_v16 }
 0x372   : > { %v1221_v10 = vpop.xlane.xlu1 %1220 }
 0x373   : > { %2189 = vrcp.f32 %v1221_v10 }
 0x378   : > { %v786_v57 = vpop.trf.xlu1 }
 0x379   : > { %812 = vst.msk [vmem:[#allocation3 + $0x8] sm:$0xf] %vm727_vm2, %v786_v57 }
 0x37d   : > { %v2190_v11 = vpop.eup %2189 }
 0x37e   : > { %v1233_v12 = vmul.f32 %v2190_v11, %v2182_v43  ;;  %v2174_v43 = vld [vmem:[%s2696_s6 + $0x8] sm:$0xff]   ;;  %v2175_v11 = vld [vmem:[%s2700_s10] sm:$0xff]  }
 0x380   : > { %v1218_v13 = vpop.xlane.xlu0 %1217  ;;  %v1237_v14 = vpack.c.bf16 %v1233_v12, %v1233_v12  ;;  %v1242_v17 = vld [vmem:[#allocation3 + $0x8] sm:$0xf]  ;;  %v2176_v12 = vld [vmem:[%s2700_s10 + $0x8] sm:$0xff]  }
 0x381   : > { %2191 = vrcp.f32 %v1218_v13  ;;  %v1340_v20 = vsel %vm1010_vm3, %v1242_v17, 0  ;;  %v1948_v17 = vld [vmem:[%s2698_s8] ss:$0 sm:$0xff] }
 0x382   : > { %2062 = vmatmul.mubr.msk.bf16.vlgmr.msra.gmra.mrb[16].mxu0 %vm1006_vm4, %v1237_v14 }
 0x383   : > { %2073 = vmatprep.mubr.msk.bf16.mxu0 %vm2285_vm1, %v2284_v16 }
 0x38b   : > { %v2192_v15 = vpop.eup %2191 }
 0x38c   : > { %v1232_v18 = vmul.f32 %v2192_v15, %v2184_v49 }
 0x38e   : > { %v1236_v19 = vpack.c.bf16 %v1232_v18, %v1232_v18 }
 0x390   : > { %2056 = vmatmul.mubr.msk.bf16.vlgmr.msra.gmra.mrb[12].mxu1 %vm1006_vm4, %v1236_v19  ;;  %v1949_v19 = vld [vmem:[%s2699_s9] ss:$0 sm:$0xff] }
 0x391   : > { %2066 = vmatpush3.bf16.msra.mxu1 %v1340_v20  ;;  %2067 = vmatprep.mubr.msk.bf16.mxu1 %vm2285_vm1, %v2284_v16 }
 0x392   : > { %2077 = vmatprep.subr.bf16.mxu1 %v2284_v16 }
 0x3a2   : > { %v1224_v21 = vpop.xlane.xlu0 %1223 }
 0x3a3   : > { %2193 = vrcp.f32 %v1224_v21 }
 0x3a6   : > { %v1227_v22 = vpop.xlane.xlu0 %1226 }
 0x3a7   : > { %2195 = vrcp.f32 %v1227_v22 }
 0x3ac   : > { %v802_v23 = vpop.trf.xlu0 }
 0x3ad   : > { %v2194_v24 = vpop.eup %2193  ;;  %813 = vst.msk [vmem:[#allocation3 + $0xc] sm:$0xf] %vm727_vm2, %v802_v23  ;;  %v2177_v23 = vld [vmem:[%s2702_s12] sm:$0xff]  }
 0x3ae   : > { %v1234_v25 = vmul.f32 %v2194_v24, %v2186_v61  ;;  %v2178_v24 = vld [vmem:[%s2702_s12 + $0x8] sm:$0xff]  }
 0x3b0   : > { %v1238_v26 = vpack.c.bf16 %v1234_v25, %v1234_v25  ;;  %v2179_v25 = vld [vmem:[%s2702_s12 + $0x10] sm:$0xff]  }
 0x3b1   : > { %v2196_v27 = vpop.eup %2195 }
 0x3b2   : > { %2068 = vmatmul.mubr.msk.bf16.vlgmr.msra.gmra.mrb[16].mxu1 %vm1006_vm4, %v1238_v26  ;;  %v1235_v28 = vmul.f32 %v2196_v27, %v2188_v63  ;;  %v1944_v63 = vld [vmem:[%s2697_s7] ss:$0 sm:$0xff]  ;;  %v2180_v26 = vld [vmem:[%s2702_s12 + $0x18] sm:$0xff]  }
 0x3b3   : > { %2081 = vmatprep.mubr.msk.bf16.mxu1 %vm2285_vm1, %v2284_v16  ;;  %2078 = vmatpush3.bf16.msra.mxu1 %v2173_v42  ;;  %v1950_v27 = vld [vmem:[%s2701_s11] ss:$0 sm:$0xff] }
 0x3b4   : > { %v1243_v29 = vld [vmem:[#allocation3 + $0xc] sm:$0xf]  ;;  %v1239_v31 = vpack.c.bf16 %v1235_v28, %v1235_v28  ;;  %2079 = vmatprep.subr.bf16.mxu1 %v2284_v16 }
 0x3b5   : > { %v1386_v30 = vsel %vm1010_vm3, %v1243_v29, 0 }
 0x3b6   : > { %2072 = vmatpush3.bf16.msra.mxu0 %v1386_v30 }
 0x3b7   : > { %2085 = vmatprep.subr.bf16.mxu0 %v2284_v16  ;;  %2080 = vmatpush3.bf16.msra.mxu1 %v2174_v43 }
 0x3b8   : > { %2093 = vmatprep.subr.bf16.mxu1 %v2284_v16 }
 0x3b9   : > { %2074 = vmatmul.mubr.msk.bf16.vlgmr.msra.gmra.mrb[20].mxu0 %vm1006_vm4, %v1239_v31 }
 0x3ba   : > { %2089 = vmatprep.mubr.msk.bf16.mxu0 %vm2285_vm1, %v2284_v16  ;;  %2086 = vmatpush3.bf16.msra.mxu0 %v2175_v11 }
 0x3bb   : > { %2087 = vmatprep.subr.bf16.mxu0 %v2284_v16 }
 0x3be   : > { %2088 = vmatpush3.bf16.msra.mxu0 %v2176_v12 }
 0x455   : > { %v1330_v32 = vpop.f32.mrb[16].mxu0 }
 0x456   : > { %v1429_v33 = vpack.c.bf16 %v1330_v32, %v1330_v32  ;;  %v2063_v34 = vpop.f32.mrb[17].mxu0 }
 0x457   : > { %v1333_v35 = vpop.f32.mrb[18].mxu0 }
 0x458   : > { %1448 = vxpose.xlu0.c.b16.start.end [1/1] (short) (narrow) %v1429_v33, 16  ;;  %v2064_v36 = vpop.f32.mrb[19].mxu0 }
 0x463   : > { %v1284_v37 = vpop.f32.mrb[12].mxu1 }
 0x464   : > { %v1428_v38 = vpack.c.bf16 %v1284_v37, %v1284_v37  ;;  %v2057_v39 = vpop.f32.mrb[13].mxu1 }
 0x465   : > { %v1287_v40 = vpop.f32.mrb[14].mxu1 }
 0x466   : > { %1432 = vxpose.xlu1.c.b16.start.end [1/1] (short) (narrow) %v1428_v38, 16  ;;  %v2058_v41 = vpop.f32.mrb[15].mxu1  ;;  %v1954_v38 = vld [vmem:[%s2703_s13] ss:$0 sm:$0xff] }
 0x485   : > { %v1376_v44 = vpop.f32.mrb[16].mxu1 }
 0x486   : > { %v1430_v45 = vpack.c.bf16 %v1376_v44, %v1376_v44  ;;  %v2069_v46 = vpop.f32.mrb[17].mxu1 }
 0x487   : > { %v1379_v47 = vpop.f32.mrb[18].mxu1 }
 0x488   : > { %1464 = vxpose.xlu1.c.b16.start.end [1/1] (short) (narrow) %v1430_v45, 16  ;;  %v2070_v48 = vpop.f32.mrb[19].mxu1 }
 0x48c   : > { %v1422_v49 = vpop.f32.mrb[20].mxu0 }
 0x48d   : > { %v1431_v50 = vpack.c.bf16 %v1422_v49, %v1422_v49  ;;  %v2075_v51 = vpop.f32.mrb[21].mxu0 }
 0x48e   : > { %v1425_v52 = vpop.f32.mrb[22].mxu0 }
 0x48f   : > { %1480 = vxpose.xlu0.c.b16.start.end [1/1] (short) (narrow) %v1431_v50, 16  ;;  %v2076_v53 = vpop.f32.mrb[23].mxu0 }
 0x4be   : > { %v1456_v54 = vpop.trf.xlu0 }
 0x4cc   : > { %v1440_v56 = vpop.trf.xlu1 }
 0x4cd   : > { %v1942_v58 = vcombine.low %v1440_v56, %v1456_v54  ;;  %v1960_v56 = vld [vmem:[%s2704_s14] ss:$0 sm:$0xff] }
 0x4cf   : > { %1508 = vxpose.xlu1.c.b16.start [1/2] (short) (narrow) %v1942_v58, 16 }
 0x4ee   : > { %v1472_v59 = vpop.trf.xlu1 }
 0x4f5   : > { %v1488_v60 = vpop.trf.xlu0 }
 0x4f6   : > { %v1943_v61 = vcombine.low %v1472_v59, %v1488_v60  ;;  %v1961_v59 = vld [vmem:[%s2705_s15] ss:$0 sm:$0xff] }
 0x4f8   : > { %1509 = vxpose.xlu1.c.b16.end [2/2] (short) (narrow) %v1943_v61, 16 }
 0x55a   : > { %v1516_v62 = vpop.trf.xlu1 }
 0x55b   : > { %2082 = vmatmul.mubr.msk.bf16.vlgmr.msra.gmra.mrb[20].mxu1 %vm628_vm0, %v1516_v62 }
 0x55c   : > { %2101 = vmatprep.mubr.msk.bf16.mxu1 %vm2285_vm1, %v2284_v16  ;;  %2094 = vmatpush3.bf16.msra.mxu1 %v2177_v23 }
 0x55d   : > { %2095 = vmatprep.subr.bf16.mxu1 %v2284_v16 }
 0x560   : > { %2096 = vmatpush3.bf16.msra.mxu1 %v2178_v24 }
 0x561   : > { %2097 = vmatprep.subr.bf16.mxu1 %v2284_v16 }
 0x564   : > { %2098 = vmatpush3.bf16.msra.mxu1 %v2179_v25 }
 0x565   : > { %2099 = vmatprep.subr.bf16.mxu1 %v2284_v16 }
 0x568   : > { %2100 = vmatpush3.bf16.msra.mxu1 %v2180_v26 }
 0x62e   : > { %v1584_v0 = vpop.f32.mrb[20].mxu1 }
 0x62f   : > { %v1585_v1 = vadd.f32 %v1944_v63, %v1584_v0  ;;  %v2083_v2 = vpop.f32.mrb[21].mxu1 }
 0x630   : > { %v1587_v3 = vpop.f32.mrb[22].mxu1 }
 0x631   : > { %v2084_v4 = vpop.f32.mrb[23].mxu1  ;;  %v1590_v6 = vadd.f32 %v1585_v1, %v2449_v5 }
 0x633   : > { %v1593_v55 = vsel %vm628_vm0, %v1590_v6, 0.0 }
 0x634   : > { %1594 = vadd.xlane.f32.xlu0 %v1593_v55 }
 0x6c1   : > { %v1595_v7 = vpop.xlane.xlu0 %1594 }
 0x6c2   : > { %v1597_v8 = vmul.f32 0.03125, %v1595_v7 }
 0x6c4   : > { %v1598_v9 = vsub.f32 %v1590_v6, %v1597_v8 }
 0x6c6   : > { %v1599_v10 = vmul.f32 %v1598_v9, %v1598_v9 }
 0x6c8   : > { %v1600_v57 = vsel %vm628_vm0, %v1599_v10, 0.0 }
 0x6c9   : > { %1601 = vadd.xlane.f32.xlu1 %v1600_v57 }
 0x756   : > { %v1602_v5 = vpop.xlane.xlu1 %1601 }
 0x757   : > { %v1603_v13 = vmul.f32 0.03125, %v1602_v5 }
 0x759   : > { %v1604_v14 = vadd.f32 1e-12, %v1603_v13 }
 0x75b   : > { %2197 = vrsqrt.f32 %v1604_v14 }
 0x765   : > { %v2198_v15 = vpop.eup %2197 }
 0x766   : > { %v1606_v18 = vmul.f32 %v2198_v15, %v1598_v9 }
 0x768   : > { %v1613_v20 = vmul.f32 %v1948_v17, %v1606_v18 }
 0x76a   : > { %v1620_v21 = vadd.f32 %v1949_v19, %v1613_v20 }
 0x76c   : > { %v1621_v22 = vpack.c.bf16 %v1620_v21, %v1620_v21 }
 0x76e   : > { %2090 = vmatmul.mubr.msk.bf16.vlgmr.msra.gmra.mrb[24].mxu0 %vm628_vm0, %v1621_v22 }
 0x841   : > { %v1682_v28 = vpop.f32.mrb[24].mxu0 }
 0x842   : > { %v1683_v29 = vadd.f32 %v1950_v27, %v1682_v28  ;;  %v2091_v30 = vpop.f32.mrb[25].mxu0 }
 0x843   : > { %v1685_v31 = vpop.f32.mrb[26].mxu0 }
 0x844   : > { %v1689_v32 = vmul.f32 0.70710677, %v1683_v29  ;;  %v2092_v33 = vpop.f32.mrb[27].mxu0  ;;  %v1688_v35 = vmul.f32 0.5, %v1683_v29 }
 0x846   : > { %2199 = verf.f32 %v1689_v32 }
 0x850   : > { %v2200_v34 = vpop.eup %2199 }
 0x851   : > { %v1691_v36 = vadd.f32 1.0, %v2200_v34 }
 0x853   : > { %v1692_v16 = vmul.f32 %v1691_v36, %v1688_v35 }
 0x855   : > { %v1693_v37 = vpack.c.bf16 %v1692_v16, %v1692_v16 }
 0x857   : > { %2102 = vmatmul.mubr.msk.bf16.vlgmr.msra.gmra.mrb[24].mxu1 %vm1733_vm5, %v1693_v37 }
 0x92a   : > { %v1771_v39 = vpop.f32.mrb[24].mxu1 }
 0x92b   : > { %v1772_v40 = vadd.f32 %v1954_v38, %v1771_v39  ;;  %v2103_v41 = vpop.f32.mrb[25].mxu1 }
 0x92c   : > { %v1774_v42 = vpop.f32.mrb[26].mxu1 }
 0x92d   : > { %v2104_v43 = vpop.f32.mrb[27].mxu1  ;;  %v1777_v44 = vadd.f32 %v1772_v40, %v1620_v21 }
 0x92f   : > { %v1780_v45 = vsel %vm628_vm0, %v1777_v44, 0.0 }
 0x930   : > { %1781 = vadd.xlane.f32.xlu0 %v1780_v45 }
 0x9bd   : > { %v1782_v46 = vpop.xlane.xlu0 %1781 }
 0x9be   : > { %v1783_v47 = vmul.f32 0.03125, %v1782_v46 }
 0x9c0   : > { %v1784_v48 = vsub.f32 %v1777_v44, %v1783_v47 }
 0x9c2   : > { %v1785_v49 = vmul.f32 %v1784_v48, %v1784_v48 }
 0x9c4   : > { %v1786_v50 = vsel %vm628_vm0, %v1785_v49, 0.0 }
 0x9c5   : > { %1787 = vadd.xlane.f32.xlu0 %v1786_v50 }
 0xa52   : > { %v1788_v51 = vpop.xlane.xlu0 %1787 }
 0xa53   : > { %v1789_v52 = vmul.f32 0.03125, %v1788_v51 }
 0xa55   : > { %v1790_v53 = vadd.f32 1e-12, %v1789_v52 }
 0xa57   : > { %2201 = vrsqrt.f32 %v1790_v53 }
 0xa61   : > { %v2202_v54 = vpop.eup %2201 }
 0xa62   : > { %v1792_v58 = vmul.f32 %v2202_v54, %v1784_v48 }
 0xa64   : > { %v1799_v60 = vmul.f32 %v1960_v56, %v1792_v58 }
 0xa66   : > { %v1806_v61 = vadd.f32 %v1961_v59, %v1799_v60 }
 0xa68   : > { %1807 = vst.msk [vmem:[%s537_s18] sm:$0xff] %vm628_vm0, %v1806_v61 }
 0xa69   : > { %2216 = shalt.err (!%p2213_p5)
}
 0xa6a   : > { %s2217_s27 = scalar_lea.hbm %s2642_s20, 128  ;;  %s2221_s18 = scalar_lea.hbm %s2706_s16, 512 }
 0xa6b   : > { %p2218_p6 = scmp.ne.s32.totalorder %s2642_s20, %s2217_s27  ;;  %p2222_p10 = scmp.lt.u32.totalorder %s2642_s20, %s2706_s16 }
 0xa6c   : > { %p2223_p11 = scmp.lt.u32.totalorder %s2221_s18, %s2217_s27  ;;  %p2225_p13 = scmp.lt.u32.totalorder %s2217_s27, %s2642_s20 }
 0xa6d   : > { %p2219_p7 = pnand %p2218_p6, %p2412_p4 }
 0xa6e   : > { %p2224_p12 = por %p2223_p11, %p2222_p10 }
 0xa6f   : > { %p2220_p9 = pneg %p2219_p7 }
 0xa70   : > { %p2226_p0 = por %p2225_p13, %p2224_p12 }
 0xa72   : > { %p2227_p1 = pnand %p2226_p0, %p2220_p9 }
 0xa74   : > { %2230 = shalt.err (!%p2227_p1)
}
 0xa75   : > { %2107 = dma.vmem_to_hbm [thread:$0]  (%p2412_p4), %s2644_s21, 128, %s2642_s20, %s1809_s28  }
 0xa76 PF: > { %s2725_s17 = sld [smem:[#allocation10_spill]]  ;;  %s2726_s24 = sld [smem:[#allocation7_spill]] }
 0xa7c   : > { %p2113_p2 = scmp.ge.s32.totalorder %s2725_s17, 2  ;;  %s1835_s25 = sand.u32 1, %s2726_s24  }
 0xa7d   : > { %s1836_s19 = scalar_lea.sflag [#allocation5], %s1835_s25 }
 0xa7e   : > { %p2110_p3 = pnand %p2113_p2, %p2419_p8 }
 0xa80   : > { %2256 = dma.done.wait (!%p2110_p3), %s1836_s19, 128  }
 0xa81   : > { %2258 = vsyncadd (!%p2110_p3), %s1836_s19, 4294967168  ;;  %s29_s26 = sadd.s32 1, %s2725_s17   ;;  %s2728_s27 = sld [smem:[#allocation8_spill]] }
 0xa82   : > { %p26_p5 = scmp.ge.s32.totalorder %s29_s26, 6   ;;  %s2729_s23 = sld [smem:[#allocation13_spill]] }
 0xa83   : > { %s2730_s24 = sld [smem:[#allocation9_spill]]  ;;  %s2731_s25 = sld [smem:[#allocation11_spill]] }
 0xa84   : > { %s2732_s21 = smov %s2265_s22  ;;  %28 = sbr.rel (!%p26_p5) target bundleno = 6 (0x6), region = 127 }
 0xa87   : > { %s2733_s22 = smov %s2728_s27 }
 0xa8b   :  { %1841 = vsyncpa [#allocation5], 1 }
 0xa8c   :  { %1843 = vsyncpa [#allocation5 + $0x1], 1 }

// kernel: tpu_custom_call.1
= control target key start
LH: loop header
LB: loop body
LE: loop exit
PB: predicated region body
PF: predicated region fallthrough
CT: control target
= control target key end

     0   :  { %s2690_s0 = inlined_call_operand.vmem [shape: f32[4,8,32], index: 0, kind: input, shape index: {}]   ;;  %s2691_s1 = inlined_call_operand.vmem [shape: f32[4,1,8], index: 1, kind: input, shape index: {}]   ;;  %s2692_s2 = inlined_call_operand.vmem [shape: bf16[32,32], index: 2, kind: input, shape index: {}]   ;;  %s2693_s3 = inlined_call_operand.vmem [shape: f32[32,1], index: 3, kind: input, shape index: {}]   ;;  %s2694_s4 = inlined_call_operand.vmem [shape: bf16[64,32], index: 4, kind: input, shape index: {}]   ;;  %s2695_s5 = inlined_call_operand.vmem [shape: f32[64,1], index: 5, kind: input, shape index: {}]   ;;  %s2696_s6 = inlined_call_operand.vmem [shape: bf16[32,32], index: 6, kind: input, shape index: {}]   ;;  %s2697_s7 = inlined_call_operand.vmem [shape: f32[1,32], index: 7, kind: input, shape index: {}]   ;;  %s2698_s8 = inlined_call_operand.vmem [shape: f32[1,32], index: 8, kind: input, shape index: {}]   ;;  %s2699_s9 = inlined_call_operand.vmem [shape: f32[1,32], index: 9, kind: input, shape index: {}]   ;;  %s2700_s10 = inlined_call_operand.vmem [shape: bf16[32,64], index: 10, kind: input, shape index: {}]   ;;  %s2701_s11 = inlined_call_operand.vmem [shape: f32[1,64], index: 11, kind: input, shape index: {}]   ;;  %s2702_s12 = inlined_call_operand.vmem [shape: bf16[64,32], index: 12, kind: input, shape index: {}]   ;;  %s2703_s13 = inlined_call_operand.vmem [shape: f32[1,32], index: 13, kind: input, shape index: {}]   ;;  %s2704_s14 = inlined_call_operand.vmem [shape: f32[1,32], index: 14, kind: input, shape index: {}]   ;;  %s2705_s15 = inlined_call_operand.vmem [shape: f32[1,32], index: 15, kind: input, shape index: {}]   ;;  %s2706_s16 = inlined_call_operand.hbm [shape: f32[4,8,32], index: 16, kind: output, shape index: {}]  }
   0x1   :  { %2714 = sst [smem:[#allocation14_spill]] %s2690_s0 }
   0x2   :  { %21 = vsyncpa [#allocation5], 0 }
   0x3   :  { %23 = vsyncpa [#allocation5 + $0x1], 0  ;;  %s2372_s21 = smov 0   ;;  %s2374_s22 = smov 0  }
   0x4   :  { %s2376_s23 = smov 0   ;;  %s2378_s24 = smov 0  }
   0x5   :  { %s2380_s25 = smov 0   ;;  %s2382_s26 = smov 0  }
   0x6 LB: > { %2715 = sst [smem:[#allocation7_spill]] %s2261_s21  ;;  %s1902_s27 = sadd.s32 4294967295, %s2281_s26   ;;  %s2281_s26 = sphi %s2382_s26, %s29_s26   ;;  %s2277_s25 = sphi %s2380_s25, %s2731_s25   ;;  %s2273_s24 = sphi %s2378_s24, %s2730_s24   ;;  %s2269_s23 = sphi %s2376_s23, %s2729_s23   ;;  %s2265_s22 = sphi %s2374_s22, %s2733_s22   ;;  %s2261_s21 = sphi %s2372_s21, %s2732_s21  }
   0x7   : > { %2716 = sst [smem:[#allocation8_spill]] %s2269_s23  ;;  %s1903_s28 = sadd.s32 4294967294, %s2281_s26  }
   0x8   : > { %2717 = sst [smem:[#allocation9_spill]] %s2277_s25  ;;  %s41_s29 = sadd.s32 1, %s2277_s25 }
   0x9   : > { %2718 = sst [smem:[#allocation10_spill]] %s2281_s26  ;;  %s396_s30 = sadd.s32 1, %s2269_s23 }
   0xa   : > { %p43_p0 = scmp.ge.s32.totalorder %s41_s29, 4  ;;  %p406_p1 = scmp.ne.s32.totalorder %s2269_s23, %s2265_s22 }
   0xb   : > { %p407_p2 = scmp.eq.s32.totalorder %s1902_s27, 3  ;;  %p412_p3 = scmp.ne.s32.totalorder %s2265_s22, %s2261_s21 }
   0xc   : > { %s2735_s29 = smov (%p43_p0, %s41_s29), 0  ;;  %p413_p5 = scmp.eq.s32.totalorder %s1903_s28, 3 }
   0xd   : > { %2719 = sst [smem:[#allocation11_spill]] %s2735_s29  ;;  %p2412_p4 = por %p407_p2, %p406_p1 }
   0xe   : > { %s391_s17 = ssub.s32 %s2277_s25, %s2735_s29  ;;  %p1906_p6 = scmp.ge.s32.totalorder %s2281_s26, 1 }
   0xf   : > { %p394_p7 = scmp.eq.s32.totalorder %s391_s17, 0  ;;  %p2419_p8 = por %p413_p5, %p412_p3 }
  0x10   : > { %p486_p9 = scmp.lt.s32.totalorder %s2281_s26, 5 }
  0x11   : > { %s2721_s18 = scalar_select %p2419_p8, 1, 0 }
  0x12   : > { %s2425_s19 = scalar_select %p394_p7, %s2269_s23, %s396_s30  }
  0x13   : > { %2722 = sst [smem:[#allocation12_spill]] %s2721_s18  ;;  %p487_p10 = pnand %p1906_p6, %p486_p9 }
  0x14   : > { %2723 = sst [smem:[#allocation13_spill]] %s2425_s19  ;;  %p538_p11 = scmp.lt.s32.totalorder (!%p487_p10), %s2273_s24, 3  ;;  %vm628_vm0 = vcmask (!%p487_p10), 261120   ;;  %v2167_v0 = vld [vmem:[%s2694_s4] sm:$0xff] (!%p487_p10)   ;;  %v2283_v2 = vmov (!%p487_p10), 0   ;;  %v824_v4 = vld [vmem:[%s2693_s3 + $0x10] sm:$0xff] (!%p487_p10) }
  0x15   : > { %490 = sbr.rel (%p487_p10) target bundleno = 2678 (0xa76), region = 84  ;;  %v2168_v1 = vld [vmem:[%s2692_s2] sm:$0xff] (!%p487_p10)   ;;  %2165 = vset.pattern.permute.xlu0 (!%p487_p10), %v2283_v2  ;;  %2166 = vset.pattern.permute.xlu1 (!%p487_p10), %v2283_v2  ;;  %s2724_s23 = sld [smem:[#allocation14_spill]] (!%p487_p10)  ;;  %v823_v6 = vld [vmem:[%s2693_s3 + $0x8] sm:$0xff] (!%p487_p10)  ;;  %v825_v8 = vld [vmem:[%s2693_s3 + $0x18] sm:$0xff] (!%p487_p10)  ;;  %v2284_v16 = vmov (!%p487_p10), 0.0  }
  0x16   : > { %2015 = vmatprep.mubr.msk.bf16.mxu0 (!%p487_p10), %vm628_vm0, %v2167_v0  ;;  %2025 = vmatprep.mubr.msk.bf16.mxu1 (!%p487_p10), %vm628_vm0, %v2168_v1  ;;  %v822_v3 = vld [vmem:[%s2693_s3] sm:$0xff] (!%p487_p10)  ;;  %v561_v11 = vld [vmem:[%s2695_s5 + $0x8] sm:$0xff] (!%p487_p10)  ;;  %v562_v14 = vld [vmem:[%s2695_s5 + $0x10] sm:$0xff] (!%p487_p10)  ;;  %vm2285_vm1 = vmmov (!%p487_p10), 0   ;;  %vm727_vm2 = vcmask (!%p487_p10), 60416   ;;  %vm1010_vm3 = vcmask (!%p487_p10), 1043456  }
  0x17   : > { %828 = vperm.xlu0 (!%p487_p10), %2165, %v822_v3   ;;  %838 = vperm.xlu1 (!%p487_p10), %2166, %v824_v4   ;;  %v560_v10 = vld [vmem:[%s2695_s5] sm:$0xff] (!%p487_p10)  ;;  %v2169_v12 = vld [vmem:[%s2694_s4 + $0x8] sm:$0xff] (!%p487_p10)   ;;  %v563_v15 = vld [vmem:[%s2695_s5 + $0x18] sm:$0xff] (!%p487_p10)  ;;  %vm1006_vm4 = vcmask (!%p487_p10), 64512   ;;  %vm1733_vm5 = vcmask (!%p487_p10), 523264   ;;  %s535_s27 = sand.u32 (!%p487_p10), 1, %s2265_s22  }
  0x18   : > { %v2170_v13 = vld [vmem:[%s2692_s2 + $0x8] sm:$0xff] (!%p487_p10)   ;;  %v2171_v17 = vld [vmem:[%s2694_s4 + $0x10] sm:$0xff] (!%p487_p10)   ;;  %v2172_v18 = vld [vmem:[%s2694_s4 + $0x18] sm:$0xff] (!%p487_p10)  }
  0x1b   : > { %833 = vperm.xlu0 (!%p487_p10), %2165, %v823_v6   ;;  %843 = vperm.xlu1 (!%p487_p10), %2166, %v825_v8  }
  0x1c   : > { %s2432_s28 = scalar_select %p538_p11, %s2273_s24, 3 }
  0x1e   : > { %s1908_s30 = sshll.u32 %s2432_s28, 3  ;;  %s544_s29 = scalar_lea.vmem %s2691_s1, %s2432_s28 }
  0x1f   : > { %s541_s18 = scalar_lea.vmem %s2724_s23, %s1908_s30  ;;  %570 = vperm.xlu0 %2165, %v560_v10   ;;  %575 = vperm.xlu1 %2166, %v561_v11   ;;  %v1933_v3 = vld [vmem:[%s544_s29] ss:$0 sm:$0xff]  ;;  %s1907_s29 = sshll.u32 %s535_s27, 3 }
  0x20   : > { %v2449_v5 = vld [vmem:[%s541_s18] sm:$0xff]  ;;  %s1963_s23 = sshll.u32 %s2273_s24, 7  ;;  %s537_s18 = scalar_lea.vmem [#allocation4], %s1907_s29 }
  0x21   : > { %v551_v7 = vpack.c.bf16 %v2449_v5, %v2449_v5  ;;  %s1823_s21 = sshll.u32 %s537_s18, 4  ;;  %s2642_s20 = scalar_lea.hbm %s2706_s16, %s1963_s23  ;;  %s2644_s21 = int_to_ptr.vmem [resolvable:$true] %s1823_s21 }
  0x22   : > { %s1809_s28 = scalar_lea.sflag [#allocation5], %s535_s27  ;;  %s2203_s17 = scalar_lea.vmem %s2644_s21, 128 }
  0x23   : > { %2105 = vmatprep.subr.msk.bf16.mxu0 %vm628_vm0, %v551_v7  ;;  %2106 = vmatprep.subr.msk.bf16.mxu1 %vm628_vm0, %v551_v7  ;;  %v642_v9 = vsel %vm628_vm0, %v551_v7, 0  ;;  %p2204_p12 = scmp.ne.s32.totalorder %s2644_s21, %s2203_s17  ;;  %s2286_s24 = smov [#allocation4]  }
  0x24   : > { %2014 = vmatpush3.bf16.xpose.msra.mxu0 %v642_v9  ;;  %2024 = vmatpush3.bf16.xpose.msra.mxu1 %v642_v9  ;;  %s2207_s29 = sshll.u32 %s2286_s24, 4  ;;  %s2208_s29 = int_to_ptr.vmem [resolvable:$false] %s2207_s29 }
  0x25   : > { %580 = vperm.xlu0 %2165, %v562_v14   ;;  %585 = vperm.xlu1 %2166, %v563_v15   ;;  %p2205_p13 = pnand %p2204_p12, %p2412_p4  ;;  %s2209_s25 = scalar_lea.vmem %s2208_s29, 256 }
  0x26   : > { %2029 = vmatprep.subr.bf16.mxu1 %v2284_v16  ;;  %2035 = vmatprep.subr.bf16.mxu0 %v2284_v16  ;;  %p2210_p1 = scmp.lt.s32.totalorder %s2644_s21, %s2208_s29  ;;  %p2211_p2 = scmp.lt.s32.totalorder %s2209_s25, %s2203_s17 }
  0x27   : > { %p2206_p0 = pneg %p2205_p13 }
  0x28   : > { %p2212_p3 = por %p2211_p2, %p2210_p1 }
  0x2a   : > { %p2213_p5 = pnand %p2212_p3, %p2206_p0 }
  0x2b   : > { %2016 = vmatmul.mubr.msk.bf16.vlgmr.msra.gmra.mrb[0].mxu0 %vm628_vm0, %v2169_v12  ;;  %2026 = vmatmul.mubr.msk.bf16.vlgmr.msra.gmra.mrb[0].mxu1 %vm628_vm0, %v2170_v13 }
  0x2c   : > { %2031 = vmatprep.mubr.msk.bf16.mxu1 %vm2285_vm1, %v2284_v16  ;;  %2019 = vmatprep.mubr.msk.bf16.mxu0 %vm628_vm0, %v2171_v17 }
  0x33   : > { %2020 = vmatmul.mubr.msk.bf16.gmra.mrb[4].mxu0 %vm628_vm0, %v2172_v18 }
  0x34   : > { %2037 = vmatprep.mubr.msk.bf16.mxu0 %vm2285_vm1, %v2284_v16 }
  0x96   : > { %v829_v19 = vpop.permute.xlu0 %828  ;;  %v839_v20 = vpop.permute.xlu1 %838 }
  0x9a   : > { %v834_v21 = vpop.permute.xlu0 %833  ;;  %v844_v22 = vpop.permute.xlu1 %843 }
  0x9e   : > { %v571_v23 = vpop.permute.xlu0 %570  ;;  %v576_v24 = vpop.permute.xlu1 %575 }
  0xa4   : > { %v581_v25 = vpop.permute.xlu0 %580  ;;  %v586_v26 = vpop.permute.xlu1 %585 }
  0xfe   : > { %v2017_v27 = vpop.f32.mrb[0].mxu0  ;;  %v2027_v28 = vpop.f32.mrb[0].mxu1 }
  0xff   : > { %v687_v29 = vadd.f32 %v2017_v27, %v581_v25  ;;  %v678_v30 = vpop.f32.mrb[1].mxu0  ;;  %v900_v31 = vpop.f32.mrb[1].mxu1  ;;  %v909_v36 = vadd.f32 %v2027_v28, %v839_v20  ;;  %v564_v28 = vld [vmem:[%s2695_s5 + $0x20] sm:$0xff] }
 0x100   : > { %v679_v32 = vadd.f32 %v678_v30, %v571_v23  ;;  %v901_v33 = vadd.f32 %v900_v31, %v829_v19  ;;  %v2028_v34 = vpop.f32.mrb[2].mxu1  ;;  %v2018_v35 = vpop.f32.mrb[2].mxu0 }
 0x101   : > { %v1968_v37 = vpack.c.bf16 %v687_v29, %v687_v29  ;;  %v903_v38 = vpop.f32.mrb[3].mxu1  ;;  %v690_v39 = vadd.f32 %v2018_v35, %v586_v26  ;;  %v681_v40 = vpop.f32.mrb[3].mxu0  ;;  %v1976_v48 = vpack.c.bf16 %v909_v36, %v909_v36  ;;  %v912_v49 = vadd.f32 %v2028_v34, %v844_v22  ;;  %v565_v29 = vld [vmem:[%s2695_s5 + $0x28] sm:$0xff] }
 0x102   : > { %v1966_v41 = vpack.c.bf16 %v679_v32, %v679_v32  ;;  %v1974_v42 = vpack.c.bf16 %v901_v33, %v901_v33  ;;  %v904_v43 = vadd.f32 %v903_v38, %v834_v21  ;;  %v682_v44 = vadd.f32 %v681_v40, %v576_v24  ;;  %v566_v32 = vld [vmem:[%s2695_s5 + $0x30] sm:$0xff]  ;;  %v567_v33 = vld [vmem:[%s2695_s5 + $0x38] sm:$0xff] }
 0x103   : > { %730 = vst.msk [vmem:[#allocation2 + $0x8] sm:$0xf] %vm727_vm2, %v1968_v37  ;;  %v1969_v45 = vpack.c.bf16 %v690_v39, %v690_v39  ;;  %v1977_v50 = vpack.c.bf16 %v912_v49, %v912_v49 }
 0x104   : > { %728 = vst.msk [vmem:[#allocation2] sm:$0xf] %vm727_vm2, %v1966_v41  ;;  %v1975_v46 = vpack.c.bf16 %v904_v43, %v904_v43  ;;  %931 = vxpose.xlu0.c.b16.start.end [1/1] (short) (narrow) %v1974_v42, 16  ;;  %v1967_v47 = vpack.c.bf16 %v682_v44, %v682_v44 }
 0x105   : > { %731 = vst.msk [vmem:[#allocation2 + $0xc] sm:$0xf] %vm727_vm2, %v1969_v45 }
 0x106   : > { %947 = vxpose.xlu1.c.b16.start.end [1/1] (short) (narrow) %v1975_v46, 16  ;;  %729 = vst.msk [vmem:[#allocation2 + $0x4] sm:$0xf] %vm727_vm2, %v1967_v47  ;;  %v2504_v55 = vpop.f32.mrb[4].mxu0 }
 0x107   : > { %v2506_v56 = vpop.f32.mrb[5].mxu0 }
 0x108   : > { %963 = vxpose.xlu0.c.b16.start.end [1/1] (short) (narrow) %v1976_v48, 16  ;;  %v2508_v57 = vpop.f32.mrb[6].mxu0 }
 0x109   : > { %v697_v2 = vpop.f32.mrb[7].mxu0 }
 0x10a   : > { %v997_v58 = vld [vmem:[#allocation2 + $0x8] sm:$0xf] }
 0x10b   : > { %v995_v51 = vld [vmem:[#allocation2] sm:$0xf]  ;;  %v1104_v61 = vsel %vm1010_vm3, %v997_v58, 0 }
 0x10c   : > { %979 = vxpose.xlu0.c.b16.start.end [1/1] (short) (narrow) %v1977_v50, 16  ;;  %v1012_v52 = vsel %vm1010_vm3, %v995_v51, 0  ;;  %v998_v60 = vld [vmem:[#allocation2 + $0xc] sm:$0xf] }
 0x10d   : > { %2030 = vmatpush3.bf16.msra.mxu1 %v1012_v52  ;;  %v996_v53 = vld [vmem:[#allocation2 + $0x4] sm:$0xf]  ;;  %v1150_v63 = vsel %vm1010_vm3, %v998_v60, 0 }
 0x10e   : > { %v1058_v54 = vsel %vm1010_vm3, %v996_v53, 0  ;;  %2041 = vmatprep.subr.bf16.mxu1 %v2284_v16 }
 0x10f   : > { %2036 = vmatpush3.bf16.msra.mxu0 %v1058_v54 }
 0x110   : > { %2047 = vmatprep.subr.bf16.mxu0 %v2284_v16 }
 0x16a   : > { %v939_v59 = vpop.trf.xlu0 }
 0x16b   : > { %2032 = vmatmul.mubr.msk.bf16.vlgmr.msra.gmra.mrb[4].mxu1 %vm1006_vm4, %v939_v59 }
 0x16c   : > { %2042 = vmatpush3.bf16.msra.mxu1 %v1104_v61  ;;  %v955_v62 = vpop.trf.xlu1  ;;  %2043 = vmatprep.mubr.msk.bf16.mxu1 %vm2285_vm1, %v2284_v16 }
 0x16d   : > { %2038 = vmatmul.mubr.msk.bf16.vlgmr.msra.gmra.mrb[8].mxu0 %vm1006_vm4, %v955_v62  ;;  %2053 = vmatprep.subr.bf16.mxu1 %v2284_v16 }
 0x16e   : > { %2048 = vmatpush3.bf16.msra.mxu0 %v1150_v63  ;;  %v971_v0 = vpop.trf.xlu0  ;;  %2049 = vmatprep.mubr.msk.bf16.mxu0 %vm2285_vm1, %v2284_v16 }
 0x16f   : > { %2059 = vmatprep.subr.bf16.mxu0 %v2284_v16 }
 0x172   : > { %v987_v1 = vpop.trf.xlu0 }
 0x173   : > { %2044 = vmatmul.mubr.msk.bf16.vlgmr.msra.gmra.mrb[8].mxu1 %vm1006_vm4, %v971_v0 }
 0x174   : > { %2055 = vmatprep.mubr.msk.bf16.mxu1 %vm2285_vm1, %v2284_v16 }
 0x175   : > { %2050 = vmatmul.mubr.msk.bf16.vlgmr.msra.gmra.mrb[12].mxu0 %vm1006_vm4, %v987_v1 }
 0x176   : > { %2061 = vmatprep.mubr.msk.bf16.mxu0 %vm2285_vm1, %v2284_v16 }
 0x23e   : > { %v1048_v4 = vpop.f32.mrb[4].mxu1 }
 0x23f   : > { %v1049_v6 = vadd.f32 %v1933_v3, %v1048_v4  ;;  %v2033_v7 = vpop.f32.mrb[5].mxu1 }
 0x240   : > { %v1051_v8 = vpop.f32.mrb[6].mxu1  ;;  %v1094_v9 = vpop.f32.mrb[8].mxu0 }
 0x241   : > { %v1095_v10 = vadd.f32 %v1933_v3, %v1094_v9  ;;  %v2034_v11 = vpop.f32.mrb[7].mxu1  ;;  %v1192_v12 = vsel %vm1006_vm4, %v1049_v6, -inf  ;;  %v2039_v13 = vpop.f32.mrb[9].mxu0 }
 0x242   : > { %1193 = vmax.xlane.f32.xlu1 %v1192_v12  ;;  %v1097_v14 = vpop.f32.mrb[10].mxu0 }
 0x243   : > { %v1195_v15 = vsel %vm1006_vm4, %v1095_v10, -inf  ;;  %v2040_v17 = vpop.f32.mrb[11].mxu0 }
 0x244   : > { %1196 = vmax.xlane.f32.xlu0 %v1195_v15 }
 0x246   : > { %v1140_v18 = vpop.f32.mrb[8].mxu1 }
 0x247   : > { %v2045_v19 = vpop.f32.mrb[9].mxu1  ;;  %v1141_v30 = vadd.f32 %v1933_v3, %v1140_v18 }
 0x248   : > { %v1186_v20 = vpop.f32.mrb[12].mxu0  ;;  %v1143_v21 = vpop.f32.mrb[10].mxu1 }
 0x249   : > { %v1187_v22 = vadd.f32 %v1933_v3, %v1186_v20  ;;  %v2046_v23 = vpop.f32.mrb[11].mxu1  ;;  %v2051_v24 = vpop.f32.mrb[13].mxu0  ;;  %v1198_v31 = vsel %vm1006_vm4, %v1141_v30, -inf }
 0x24a   : > { %v1189_v25 = vpop.f32.mrb[14].mxu0 }
 0x24b   : > { %v1201_v26 = vsel %vm1006_vm4, %v1187_v22, -inf  ;;  %v2052_v27 = vpop.f32.mrb[15].mxu0 }
 0x24c   : > { %1202 = vmax.xlane.f32.xlu0 %v1201_v26 }
 0x253   : > { %590 = vperm.xlu1 %2166, %v564_v28  }
 0x262   : > { %595 = vperm.xlu0 %2165, %v565_v29  }
 0x277   : > { %1199 = vmax.xlane.f32.xlu1 %v1198_v31 }
 0x288   : > { %600 = vperm.xlu1 %2166, %v566_v32  }
 0x28c   : > { %605 = vperm.xlu1 %2166, %v567_v33  }
 0x2cf   : > { %v1194_v34 = vpop.xlane.xlu1 %1193 }
 0x2d0   : > { %v1204_v41 = vsub.f32 %v1049_v6, %v1194_v34 }
 0x2d1   : > { %v1197_v35 = vpop.xlane.xlu0 %1196 }
 0x2d2   : > { %v1205_v36 = vsub.f32 %v1095_v10, %v1197_v35  ;;  %v1208_v44 = vmul.f32 1.442695, %v1204_v41 }
 0x2d3   : > { %v591_v37 = vpop.permute.xlu1 %590 }
 0x2d4   : > { %v1210_v38 = vmul.f32 1.442695, %v1205_v36  ;;  %v695_v39 = vadd.f32 %v2506_v56, %v591_v37 }
 0x2d6   : > { %v1970_v40 = vpack.c.bf16 %v695_v39, %v695_v39  ;;  %2181 = vpow2.f32 %v1210_v38 }
 0x2d7   : > { %2183 = vpow2.f32 %v1208_v44 }
 0x2d8   : > { %746 = vxpose.xlu1.c.b16.start.end [1/1] (short) (narrow) %v1970_v40, 16 }
 0x2d9   : > { %v1203_v42 = vpop.xlane.xlu0 %1202 }
 0x2da   : > { %v1207_v51 = vsub.f32 %v1187_v22, %v1203_v42  ;;  %v2173_v42 = vld [vmem:[%s2696_s6] sm:$0xff]  }
 0x2dc   : > { %v1214_v54 = vmul.f32 1.442695, %v1207_v51 }
 0x2e0   : > { %v2182_v43 = vpop.eup %2181 }
 0x2e1   : > { %v596_v45 = vpop.permute.xlu0 %595  ;;  %v1219_v48 = vsel %vm1006_vm4, %v2182_v43, 0.0  ;;  %v2184_v49 = vpop.eup %2183 }
 0x2e2   : > { %v698_v46 = vadd.f32 %v697_v2, %v596_v45  ;;  %v1216_v50 = vsel %vm1006_vm4, %v2184_v49, 0.0 }
 0x2e4   : > { %v1971_v47 = vpack.c.bf16 %v698_v46, %v698_v46 }
 0x2e5   : > { %1220 = vadd.xlane.f32.xlu1 %v1219_v48 }
 0x2e6   : > { %762 = vxpose.xlu0.c.b16.start.end [1/1] (short) (narrow) %v1971_v47, 16 }
 0x2f3   : > { %1217 = vadd.xlane.f32.xlu0 %v1216_v50 }
 0x304   : > { %v1200_v52 = vpop.xlane.xlu1 %1199 }
 0x305   : > { %v1206_v53 = vsub.f32 %v1141_v30, %v1200_v52 }
 0x307   : > { %v1212_v56 = vmul.f32 1.442695, %v1206_v53 }
 0x308   : > { %v601_v58 = vpop.permute.xlu1 %600 }
 0x309   : > { %2185 = vpow2.f32 %v1212_v56  ;;  %v703_v59 = vadd.f32 %v2504_v55, %v601_v58 }
 0x30a   : > { %2187 = vpow2.f32 %v1214_v54 }
 0x30b   : > { %v1972_v60 = vpack.c.bf16 %v703_v59, %v703_v59 }
 0x30c   : > { %v606_v1 = vpop.permute.xlu1 %605 }
 0x30d   : > { %v706_v3 = vadd.f32 %v2508_v57, %v606_v1 }
 0x30f   : > { %v1973_v4 = vpack.c.bf16 %v706_v3, %v706_v3 }
 0x312   : > { %778 = vxpose.xlu1.c.b16.start.end [1/1] (short) (narrow) %v1972_v60, 16 }
 0x313   : > { %v2186_v61 = vpop.eup %2185 }
 0x314   : > { %v1222_v62 = vsel %vm1006_vm4, %v2186_v61, 0.0  ;;  %v2188_v63 = vpop.eup %2187 }
 0x315   : > { %1223 = vadd.xlane.f32.xlu0 %v1222_v62  ;;  %v1225_v0 = vsel %vm1006_vm4, %v2188_v63, 0.0 }
 0x319   : > { %1226 = vadd.xlane.f32.xlu0 %v1225_v0 }
 0x33e   : > { %v754_v2 = vpop.trf.xlu1 }
 0x33f   : > { %810 = vst.msk [vmem:[#allocation3] sm:$0xf] %vm727_vm2, %v754_v2 }
 0x346   : > { %794 = vxpose.xlu0.c.b16.start.end [1/1] (short) (narrow) %v1973_v4, 16  ;;  %v1240_v6 = vld [vmem:[#allocation3] sm:$0xf] }
 0x347   : > { %v1248_v55 = vsel %vm1010_vm3, %v1240_v6, 0 }
 0x348   : > { %2054 = vmatpush3.bf16.msra.mxu1 %v1248_v55 }
 0x349   : > { %2065 = vmatprep.subr.bf16.mxu1 %v2284_v16 }
 0x34c   : > { %v770_v7 = vpop.trf.xlu0 }
 0x34d   : > { %811 = vst.msk [vmem:[#allocation3 + $0x4] sm:$0xf] %vm727_vm2, %v770_v7 }
 0x354   : > { %v1241_v8 = vld [vmem:[#allocation3 + $0x4] sm:$0xf] }
 0x355   : > { %v1294_v9 = vsel %vm1010_vm3, %v1241_v8, 0 }
 0x356   : > { %2060 = vmatpush3.bf16.msra.mxu0 %v1294_v9 }
 0x357   : > { %2071 = vmatprep.subr.bf16.mxu0 %v2284_v16 }
 0x372   : > { %v1221_v10 = vpop.xlane.xlu1 %1220 }
 0x373   : > { %2189 = vrcp.f32 %v1221_v10 }
 0x378   : > { %v786_v57 = vpop.trf.xlu1 }
 0x379   : > { %812 = vst.msk [vmem:[#allocation3 + $0x8] sm:$0xf] %vm727_vm2, %v786_v57 }
 0x37d   : > { %v2190_v11 = vpop.eup %2189 }
 0x37e   : > { %v1233_v12 = vmul.f32 %v2190_v11, %v2182_v43  ;;  %v2174_v43 = vld [vmem:[%s2696_s6 + $0x8] sm:$0xff]   ;;  %v2175_v11 = vld [vmem:[%s2700_s10] sm:$0xff]  }
 0x380   : > { %v1218_v13 = vpop.xlane.xlu0 %1217  ;;  %v1237_v14 = vpack.c.bf16 %v1233_v12, %v1233_v12  ;;  %v1242_v17 = vld [vmem:[#allocation3 + $0x8] sm:$0xf]  ;;  %v2176_v12 = vld [vmem:[%s2700_s10 + $0x8] sm:$0xff]  }
 0x381   : > { %2191 = vrcp.f32 %v1218_v13  ;;  %v1340_v20 = vsel %vm1010_vm3, %v1242_v17, 0  ;;  %v1948_v17 = vld [vmem:[%s2698_s8] ss:$0 sm:$0xff] }
 0x382   : > { %2062 = vmatmul.mubr.msk.bf16.vlgmr.msra.gmra.mrb[16].mxu0 %vm1006_vm4, %v1237_v14 }
 0x383   : > { %2073 = vmatprep.mubr.msk.bf16.mxu0 %vm2285_vm1, %v2284_v16 }
 0x38b   : > { %v2192_v15 = vpop.eup %2191 }
 0x38c   : > { %v1232_v18 = vmul.f32 %v2192_v15, %v2184_v49 }
 0x38e   : > { %v1236_v19 = vpack.c.bf16 %v1232_v18, %v1232_v18 }
 0x390   : > { %2056 = vmatmul.mubr.msk.bf16.vlgmr.msra.gmra.mrb[12].mxu1 %vm1006_vm4, %v1236_v19  ;;  %v1949_v19 = vld [vmem:[%s2699_s9] ss:$0 sm:$0xff] }
 0x391   : > { %2066 = vmatpush3.bf16.msra.mxu1 %v1340_v20  ;;  %2067 = vmatprep.mubr.msk.bf16.mxu1 %vm2285_vm1, %v2284_v16 }
 0x392   : > { %2077 = vmatprep.subr.bf16.mxu1 %v2284_v16 }
 0x3a2   : > { %v1224_v21 = vpop.xlane.xlu0 %1223 }
 0x3a3   : > { %2193 = vrcp.f32 %v1224_v21 }
 0x3a6   : > { %v1227_v22 = vpop.xlane.xlu0 %1226 }
 0x3a7   : > { %2195 = vrcp.f32 %v1227_v22 }
 0x3ac   : > { %v802_v23 = vpop.trf.xlu0 }
 0x3ad   : > { %v2194_v24 = vpop.eup %2193  ;;  %813 = vst.msk [vmem:[#allocation3 + $0xc] sm:$0xf] %vm727_vm2, %v802_v23  ;;  %v2177_v23 = vld [vmem:[%s2702_s12] sm:$0xff]  }
 0x3ae   : > { %v1234_v25 = vmul.f32 %v2194_v24, %v2186_v61  ;;  %v2178_v24 = vld [vmem:[%s2702_s12 + $0x8] sm:$0xff]  }
 0x3b0   : > { %v1238_v26 = vpack.c.bf16 %v1234_v25, %v1234_v25  ;;  %v2179_v25 = vld [vmem:[%s2702_s12 + $0x10] sm:$0xff]  }
 0x3b1   : > { %v2196_v27 = vpop.eup %2195 }
 0x3b2   : > { %2068 = vmatmul.mubr.msk.bf16.vlgmr.msra.gmra.mrb[16].mxu1 %vm1006_vm4, %v1238_v26  ;;  %v1235_v28 = vmul.f32 %v2196_v27, %v2188_v63  ;;  %v1944_v63 = vld [vmem:[%s2697_s7] ss:$0 sm:$0xff]  ;;  %v2180_v26 = vld [vmem:[%s2702_s12 + $0x18] sm:$0xff]  }
 0x3b3   : > { %2081 = vmatprep.mubr.msk.bf16.mxu1 %vm2285_vm1, %v2284_v16  ;;  %2078 = vmatpush3.bf16.msra.mxu1 %v2173_v42  ;;  %v1950_v27 = vld [vmem:[%s2701_s11] ss:$0 sm:$0xff] }
 0x3b4   : > { %v1243_v29 = vld [vmem:[#allocation3 + $0xc] sm:$0xf]  ;;  %v1239_v31 = vpack.c.bf16 %v1235_v28, %v1235_v28  ;;  %2079 = vmatprep.subr.bf16.mxu1 %v2284_v16 }
 0x3b5   : > { %v1386_v30 = vsel %vm1010_vm3, %v1243_v29, 0 }
 0x3b6   : > { %2072 = vmatpush3.bf16.msra.mxu0 %v1386_v30 }
 0x3b7   : > { %2085 = vmatprep.subr.bf16.mxu0 %v2284_v16  ;;  %2080 = vmatpush3.bf16.msra.mxu1 %v2174_v43 }
 0x3b8   : > { %2093 = vmatprep.subr.bf16.mxu1 %v2284_v16 }
 0x3b9   : > { %2074 = vmatmul.mubr.msk.bf16.vlgmr.msra.gmra.mrb[20].mxu0 %vm1006_vm4, %v1239_v31 }
 0x3ba   : > { %2089 = vmatprep.mubr.msk.bf16.mxu0 %vm2285_vm1, %v2284_v16  ;;  %2086 = vmatpush3.bf16.msra.mxu0 %v2175_v11 }
 0x3bb   : > { %2087 = vmatprep.subr.bf16.mxu0 %v2284_v16 }
 0x3be   : > { %2088 = vmatpush3.bf16.msra.mxu0 %v2176_v12 }
 0x455   : > { %v1330_v32 = vpop.f32.mrb[16].mxu0 }
 0x456   : > { %v1429_v33 = vpack.c.bf16 %v1330_v32, %v1330_v32  ;;  %v2063_v34 = vpop.f32.mrb[17].mxu0 }
 0x457   : > { %v1333_v35 = vpop.f32.mrb[18].mxu0 }
 0x458   : > { %1448 = vxpose.xlu0.c.b16.start.end [1/1] (short) (narrow) %v1429_v33, 16  ;;  %v2064_v36 = vpop.f32.mrb[19].mxu0 }
 0x463   : > { %v1284_v37 = vpop.f32.mrb[12].mxu1 }
 0x464   : > { %v1428_v38 = vpack.c.bf16 %v1284_v37, %v1284_v37  ;;  %v2057_v39 = vpop.f32.mrb[13].mxu1 }
 0x465   : > { %v1287_v40 = vpop.f32.mrb[14].mxu1 }
 0x466   : > { %1432 = vxpose.xlu1.c.b16.start.end [1/1] (short) (narrow) %v1428_v38, 16  ;;  %v2058_v41 = vpop.f32.mrb[15].mxu1  ;;  %v1954_v38 = vld [vmem:[%s2703_s13] ss:$0 sm:$0xff] }
 0x485   : > { %v1376_v44 = vpop.f32.mrb[16].mxu1 }
 0x486   : > { %v1430_v45 = vpack.c.bf16 %v1376_v44, %v1376_v44  ;;  %v2069_v46 = vpop.f32.mrb[17].mxu1 }
 0x487   : > { %v1379_v47 = vpop.f32.mrb[18].mxu1 }
 0x488   : > { %1464 = vxpose.xlu1.c.b16.start.end [1/1] (short) (narrow) %v1430_v45, 16  ;;  %v2070_v48 = vpop.f32.mrb[19].mxu1 }
 0x48c   : > { %v1422_v49 = vpop.f32.mrb[20].mxu0 }
 0x48d   : > { %v1431_v50 = vpack.c.bf16 %v1422_v49, %v1422_v49  ;;  %v2075_v51 = vpop.f32.mrb[21].mxu0 }
 0x48e   : > { %v1425_v52 = vpop.f32.mrb[22].mxu0 }
 0x48f   : > { %1480 = vxpose.xlu0.c.b16.start.end [1/1] (short) (narrow) %v1431_v50, 16  ;;  %v2076_v53 = vpop.f32.mrb[23].mxu0 }
 0x4be   : > { %v1456_v54 = vpop.trf.xlu0 }
 0x4cc   : > { %v1440_v56 = vpop.trf.xlu1 }
 0x4cd   : > { %v1942_v58 = vcombine.low %v1440_v56, %v1456_v54  ;;  %v1960_v56 = vld [vmem:[%s2704_s14] ss:$0 sm:$0xff] }
 0x4cf   : > { %1508 = vxpose.xlu1.c.b16.start [1/2] (short) (narrow) %v1942_v58, 16 }
 0x4ee   : > { %v1472_v59 = vpop.trf.xlu1 }
 0x4f5   : > { %v1488_v60 = vpop.trf.xlu0 }
 0x4f6   : > { %v1943_v61 = vcombine.low %v1472_v59, %v1488_v60  ;;  %v1961_v59 = vld [vmem:[%s2705_s15] ss:$0 sm:$0xff] }
 0x4f8   : > { %1509 = vxpose.xlu1.c.b16.end [2/2] (short) (narrow) %v1943_v61, 16 }
 0x55a   : > { %v1516_v62 = vpop.trf.xlu1 }
 0x55b   : > { %2082 = vmatmul.mubr.msk.bf16.vlgmr.msra.gmra.mrb[20].mxu1 %vm628_vm0, %v1516_v62 }
 0x55c   : > { %2101 = vmatprep.mubr.msk.bf16.mxu1 %vm2285_vm1, %v2284_v16  ;;  %2094 = vmatpush3.bf16.msra.mxu1 %v2177_v23 }
 0x55d   : > { %2095 = vmatprep.subr.bf16.mxu1 %v2284_v16 }
 0x560   : > { %2096 = vmatpush3.bf16.msra.mxu1 %v2178_v24 }
 0x561   : > { %2097 = vmatprep.subr.bf16.mxu1 %v2284_v16 }
 0x564   : > { %2098 = vmatpush3.bf16.msra.mxu1 %v2179_v25 }
 0x565   : > { %2099 = vmatprep.subr.bf16.mxu1 %v2284_v16 }
 0x568   : > { %2100 = vmatpush3.bf16.msra.mxu1 %v2180_v26 }
 0x62e   : > { %v1584_v0 = vpop.f32.mrb[20].mxu1 }
 0x62f   : > { %v1585_v1 = vadd.f32 %v1944_v63, %v1584_v0  ;;  %v2083_v2 = vpop.f32.mrb[21].mxu1 }
 0x630   : > { %v1587_v3 = vpop.f32.mrb[22].mxu1 }
 0x631   : > { %v2084_v4 = vpop.f32.mrb[23].mxu1  ;;  %v1590_v6 = vadd.f32 %v1585_v1, %v2449_v5 }
 0x633   : > { %v1593_v55 = vsel %vm628_vm0, %v1590_v6, 0.0 }
 0x634   : > { %1594 = vadd.xlane.f32.xlu0 %v1593_v55 }
 0x6c1   : > { %v1595_v7 = vpop.xlane.xlu0 %1594 }
 0x6c2   : > { %v1597_v8 = vmul.f32 0.03125, %v1595_v7 }
 0x6c4   : > { %v1598_v9 = vsub.f32 %v1590_v6, %v1597_v8 }
 0x6c6   : > { %v1599_v10 = vmul.f32 %v1598_v9, %v1598_v9 }
 0x6c8   : > { %v1600_v57 = vsel %vm628_vm0, %v1599_v10, 0.0 }
 0x6c9   : > { %1601 = vadd.xlane.f32.xlu1 %v1600_v57 }
 0x756   : > { %v1602_v5 = vpop.xlane.xlu1 %1601 }
 0x757   : > { %v1603_v13 = vmul.f32 0.03125, %v1602_v5 }
 0x759   : > { %v1604_v14 = vadd.f32 1e-12, %v1603_v13 }
 0x75b   : > { %2197 = vrsqrt.f32 %v1604_v14 }
 0x765   : > { %v2198_v15 = vpop.eup %2197 }
 0x766   : > { %v1606_v18 = vmul.f32 %v2198_v15, %v1598_v9 }
 0x768   : > { %v1613_v20 = vmul.f32 %v1948_v17, %v1606_v18 }
 0x76a   : > { %v1620_v21 = vadd.f32 %v1949_v19, %v1613_v20 }
 0x76c   : > { %v1621_v22 = vpack.c.bf16 %v1620_v21, %v1620_v21 }
 0x76e   : > { %2090 = vmatmul.mubr.msk.bf16.vlgmr.msra.gmra.mrb[24].mxu0 %vm628_vm0, %v1621_v22 }
 0x841   : > { %v1682_v28 = vpop.f32.mrb[24].mxu0 }
 0x842   : > { %v1683_v29 = vadd.f32 %v1950_v27, %v1682_v28  ;;  %v2091_v30 = vpop.f32.mrb[25].mxu0 }
 0x843   : > { %v1685_v31 = vpop.f32.mrb[26].mxu0 }
 0x844   : > { %v1689_v32 = vmul.f32 0.70710677, %v1683_v29  ;;  %v2092_v33 = vpop.f32.mrb[27].mxu0  ;;  %v1688_v35 = vmul.f32 0.5, %v1683_v29 }
 0x846   : > { %2199 = verf.f32 %v1689_v32 }
 0x850   : > { %v2200_v34 = vpop.eup %2199 }
 0x851   : > { %v1691_v36 = vadd.f32 1.0, %v2200_v34 }
 0x853   : > { %v1692_v16 = vmul.f32 %v1691_v36, %v1688_v35 }
 0x855   : > { %v1693_v37 = vpack.c.bf16 %v1692_v16, %v1692_v16 }
 0x857   : > { %2102 = vmatmul.mubr.msk.bf16.vlgmr.msra.gmra.mrb[24].mxu1 %vm1733_vm5, %v1693_v37 }
 0x92a   : > { %v1771_v39 = vpop.f32.mrb[24].mxu1 }
 0x92b   : > { %v1772_v40 = vadd.f32 %v1954_v38, %v1771_v39  ;;  %v2103_v41 = vpop.f32.mrb[25].mxu1 }
 0x92c   : > { %v1774_v42 = vpop.f32.mrb[26].mxu1 }
 0x92d   : > { %v2104_v43 = vpop.f32.mrb[27].mxu1  ;;  %v1777_v44 = vadd.f32 %v1772_v40, %v1620_v21 }
 0x92f   : > { %v1780_v45 = vsel %vm628_vm0, %v1777_v44, 0.0 }
 0x930   : > { %1781 = vadd.xlane.f32.xlu0 %v1780_v45 }
 0x9bd   : > { %v1782_v46 = vpop.xlane.xlu0 %1781 }
 0x9be   : > { %v1783_v47 = vmul.f32 0.03125, %v1782_v46 }
 0x9c0   : > { %v1784_v48 = vsub.f32 %v1777_v44, %v1783_v47 }
 0x9c2   : > { %v1785_v49 = vmul.f32 %v1784_v48, %v1784_v48 }
 0x9c4   : > { %v1786_v50 = vsel %vm628_vm0, %v1785_v49, 0.0 }
 0x9c5   : > { %1787 = vadd.xlane.f32.xlu0 %v1786_v50 }
 0xa52   : > { %v1788_v51 = vpop.xlane.xlu0 %1787 }
 0xa53   : > { %v1789_v52 = vmul.f32 0.03125, %v1788_v51 }
 0xa55   : > { %v1790_v53 = vadd.f32 1e-12, %v1789_v52 }
 0xa57   : > { %2201 = vrsqrt.f32 %v1790_v53 }
 0xa61   : > { %v2202_v54 = vpop.eup %2201 }
 0xa62   : > { %v1792_v58 = vmul.f32 %v2202_v54, %v1784_v48 }
 0xa64   : > { %v1799_v60 = vmul.f32 %v1960_v56, %v1792_v58 }
 0xa66   : > { %v1806_v61 = vadd.f32 %v1961_v59, %v1799_v60 }
 0xa68   : > { %1807 = vst.msk [vmem:[%s537_s18] sm:$0xff] %vm628_vm0, %v1806_v61 }
 0xa69   : > { %2216 = shalt.err (!%p2213_p5)
}
 0xa6a   : > { %s2217_s27 = scalar_lea.hbm %s2642_s20, 128  ;;  %s2221_s18 = scalar_lea.hbm %s2706_s16, 512 }
 0xa6b   : > { %p2218_p6 = scmp.ne.s32.totalorder %s2642_s20, %s2217_s27  ;;  %p2222_p10 = scmp.lt.u32.totalorder %s2642_s20, %s2706_s16 }
 0xa6c   : > { %p2223_p11 = scmp.lt.u32.totalorder %s2221_s18, %s2217_s27  ;;  %p2225_p13 = scmp.lt.u32.totalorder %s2217_s27, %s2642_s20 }
 0xa6d   : > { %p2219_p7 = pnand %p2218_p6, %p2412_p4 }
 0xa6e   : > { %p2224_p12 = por %p2223_p11, %p2222_p10 }
 0xa6f   : > { %p2220_p9 = pneg %p2219_p7 }
 0xa70   : > { %p2226_p0 = por %p2225_p13, %p2224_p12 }
 0xa72   : > { %p2227_p1 = pnand %p2226_p0, %p2220_p9 }
 0xa74   : > { %2230 = shalt.err (!%p2227_p1)
}
 0xa75   : > { %2107 = dma.vmem_to_hbm [thread:$0]  (%p2412_p4), %s2644_s21, 128, %s2642_s20, %s1809_s28  }
 0xa76 PF: > { %s2725_s17 = sld [smem:[#allocation10_spill]]  ;;  %s2726_s24 = sld [smem:[#allocation7_spill]] }
 0xa7c   : > { %p2113_p2 = scmp.ge.s32.totalorder %s2725_s17, 2  ;;  %s1835_s25 = sand.u32 1, %s2726_s24  }
 0xa7d   : > { %s1836_s19 = scalar_lea.sflag [#allocation5], %s1835_s25 }
 0xa7e   : > { %p2110_p3 = pnand %p2113_p2, %p2419_p8 }
 0xa80   : > { %2256 = dma.done.wait (!%p2110_p3), %s1836_s19, 128  }
 0xa81   : > { %2258 = vsyncadd (!%p2110_p3), %s1836_s19, 4294967168  ;;  %s29_s26 = sadd.s32 1, %s2725_s17   ;;  %s2728_s27 = sld [smem:[#allocation8_spill]] }
 0xa82   : > { %p26_p5 = scmp.ge.s32.totalorder %s29_s26, 6   ;;  %s2729_s23 = sld [smem:[#allocation13_spill]] }
 0xa83   : > { %s2730_s24 = sld [smem:[#allocation9_spill]]  ;;  %s2731_s25 = sld [smem:[#allocation11_spill]] }
 0xa84   : > { %s2732_s21 = smov %s2265_s22  ;;  %28 = sbr.rel (!%p26_p5) target bundleno = 6 (0x6), region = 127 }
 0xa87   : > { %s2733_s22 = smov %s2728_s27 }
 0xa8b   :  { %1841 = vsyncpa [#allocation5], 1 }
 0xa8c   :  { %1843 = vsyncpa [#allocation5 + $0x1], 1 }

</bundles_post_ra>
